<compile_context>
chip_gen: v6e
topology: v6e:2x2x1
jax: 0.10.0
libtpu: 0.0.40
codegen_flags: <defaults>
</compile_context>

<pallas_src>
import jax
import jax.numpy as jnp
from jax.experimental import pallas as pl
from jax.experimental.pallas import tpu as pltpu


# ----------------------------- Pallas kernel --------------------------------

def _deepgoplus_kernel(x_ref, mask_ref, wbig_ref, bbig_ref, fcw_ref, fcb_ref,
                       out_ref, patch_ref, acc_ref):
    # x_ref:     (L_pad, C)          f32  raw sequence for this batch row (time-major)
    # mask_ref:  (T_tile, num_k*O)   f32  additive {0, -1e30} validity mask, time block t
    # wbig_ref:  (K_max*C, num_k*O)  bf16 all conv branches stacked along the output dim
    # bbig_ref:  (1, num_k*O)        f32  conv biases (branch-major, torch cat(dim=1) order)
    # fcw_ref:   (num_k*O, TN)       bf16 FC weight tile for class block c
    # fcb_ref:   (1, TN)             f32  FC bias tile
    # out_ref:   (1, TN)             f32  sigmoid(FC) for (batch b, class block c)
    # patch_ref: (T_tile, K_max*C)   f32  scratch: im2col tile built in VMEM
    # acc_ref:   (1, num_k*O)        f32  scratch: running max over time blocks
    c_blk = pl.program_id(1)
    t_blk = pl.program_id(2)
    t_last = pl.num_programs(2) - 1
    t_tile = mask_ref.shape[0]
    C = x_ref.shape[1]
    k_max = wbig_ref.shape[0] // C

    @pl.when(c_blk == 0)            # conv + max reduction is class-block independent
    def _conv_step():
        @pl.when(t_blk == 0)
        def _init():
            acc_ref[...] = jnp.full(acc_ref.shape, -1e30, jnp.float32)

        # Build the (T_tile, K_max*C) im2col tile in VMEM: K_max shifted copies of the
        # resident raw sequence (tap-major / channel-minor, matching W_big's rows).
        row0 = pl.multiple_of(t_blk * t_tile, t_tile)
        for j in range(k_max):      # static trip count; static lane offsets
            patch_ref[:, j * C:(j + 1) * C] = x_ref[pl.ds(row0 + j, t_tile), :]

        # ONE deep MXU matmul covers every conv branch and every tap (bf16 in, f32 acc).
        y = jnp.dot(patch_ref[...].astype(jnp.bfloat16), wbig_ref[...],
                    preferred_element_type=jnp.float32)        # (T_tile, num_k*O) f32
        y = y + mask_ref[...]                                  # additive -1e30 on invalid rows
        acc_ref[...] = jnp.maximum(acc_ref[...],
                                   jnp.max(y, axis=0, keepdims=True))

    @pl.when(t_blk == t_last)       # finalize: conv bias + FC(class block c) + sigmoid
    def _epilogue():
        feats = acc_ref[...] + bbig_ref[...]                   # (1, num_k*O) f32
        logits = jnp.dot(feats.astype(fcw_ref.dtype), fcw_ref[...],
                         preferred_element_type=jnp.float32) + fcb_ref[...]
        # sigmoid: exp and reciprocal both routed to the EUP; logits stay f32.
        out_ref[...] = pl.reciprocal(1.0 + jnp.exp(-logits),
                                     approx=True).astype(out_ref.dtype)


# ------------------------------- wrapper ------------------------------------

def deepgoplus_forward(input_seq, params, *, kernels, t_tile=32, class_tile=128,
                       input_description=None, input_vector=None, emb_tensor=None):
    """DeepGOPlus.forward: only input_seq is used (other args ignored, as in torch)."""
    w_big, b_big, fc_w_t, fc_b = params
    B, C, L = input_seq.shape
    num_k = len(kernels)
    K_max = kernels[-1]
    nko = w_big.shape[1]                        # num_k * in_nc
    n_classes = fc_w_t.shape[1]

    assert t_tile % 8 == 0 and class_tile % 128 == 0
    T_out = L - kernels[0] + 1                  # longest 'valid' conv output length
    T_pad = pl.cdiv(T_out, t_tile) * t_tile     # time rounded to the time-tile
    L_pad = T_pad + K_max - 1                   # so every tap slice stays in-bounds
    n_cls_pad = pl.cdiv(n_classes, class_tile) * class_tile   # lane-dense output

    # Layout glue only: NCL -> (B, time, channel), right zero-pad time.
    x_tlc = jnp.transpose(input_seq, (0, 2, 1)).astype(jnp.float32)
    x_tlc = jnp.pad(x_tlc, ((0, 0), (0, L_pad - L), (0, 0)))

    # Additive validity mask: 0 where position t is a valid conv output for that
    # branch's kernel size, -1e30 otherwise (finite, bf16/inf-safe).
    t_idx = jnp.arange(T_pad, dtype=jnp.int32)[:, None]
    valid = jnp.repeat(jnp.array([L - k + 1 for k in kernels], jnp.int32),
                       nko // num_k)[None, :]
    add_mask = jnp.where(t_idx < valid, 0.0, -1e30).astype(jnp.float32)

    # Lane-dense, class-tiled FC params (bf16 weight, f32 bias).
    fcw_pad = jnp.pad(fc_w_t, ((0, 0), (0, n_cls_pad - n_classes))).astype(jnp.bfloat16)
    fcb_pad = jnp.pad(fc_b, (0, n_cls_pad - n_classes)).astype(jnp.float32)[None, :]

    grid = (B, n_cls_pad // class_tile, T_pad // t_tile)   # (batch, class blk, time blk)

    out = pl.pallas_call(
        _deepgoplus_kernel,
        out_shape=jax.ShapeDtypeStruct((B, 1, n_cls_pad), jnp.float32),
        grid=grid,
        in_specs=[
            # raw sequence: block index constant over (c, t) -> DMA'd once per batch row
            pl.BlockSpec((None, L_pad, C), lambda b, c, t: (b, 0, 0)),
            # validity mask: streamed (and auto double-buffered) per time block
            pl.BlockSpec((t_tile, nko), lambda b, c, t: (t, 0)),
            pl.BlockSpec((K_max * C, nko), lambda b, c, t: (0, 0)),     # conv weights
            pl.BlockSpec((1, nko), lambda b, c, t: (0, 0)),             # conv biases
            pl.BlockSpec((nko, class_tile), lambda b, c, t: (0, c)),    # FC weight tile
            pl.BlockSpec((1, class_tile), lambda b, c, t: (0, c)),      # FC bias tile
        ],
        out_specs=pl.BlockSpec((None, 1, class_tile), lambda b, c, t: (b, 0, c)),
        scratch_shapes=[
            pltpu.VMEM((t_tile, K_max * C), jnp.float32),   # im2col patch tile
            pltpu.VMEM((1, nko), jnp.float32),              # running-max accumulator
        ],
        compiler_params=pltpu.CompilerParams(
            # batch is parallel (extent >= 2 -> both v7x TCs); class + time stay
            # sequential so the conv reduction cached in acc_ref is reused per class blk.
            dimension_semantics=("parallel", "arbitrary", "arbitrary"),
            vmem_limit_bytes=32 * 1024 * 1024,
        ),
    )(x_tlc, add_mask, w_big, b_big, fcw_pad, fcb_pad)

    return out.reshape(B, n_cls_pad)[:, :n_classes]


# ------------------------- parameter initialization -------------------------

def _xavier_normal(key, shape, fan_in, fan_out, gain):
    std = gain * (2.0 / (fan_in + fan_out)) ** 0.5
    return std * jax.random.normal(key, shape, dtype=jnp.float32)


def init_params(key, *, input_nc, in_nc, kernels, n_classes, gain=0.5):
    """Synthetic xavier-style init with the module's parameter shapes.

    Weights are rounded to bf16 (the kernel's MXU storage dtype); the reference params
    hold the same bf16-rounded values upcast to f32 so the pure-JAX oracle is
    apples-to-apples with the bf16-operand kernel.
    """
    num_k = len(kernels)
    K_max = kernels[-1]
    keys = jax.random.split(key, 2 * num_k + 2)

    w_stack = jnp.zeros((num_k, K_max, input_nc, in_nc), jnp.float32)
    conv_ws, conv_bs = [], []
    for idx, k in enumerate(kernels):
        w = _xavier_normal(keys[2 * idx], (in_nc, input_nc, k),
                           fan_in=input_nc * k, fan_out=in_nc * k, gain=gain)
        w = w.astype(jnp.bfloat16).astype(jnp.float32)            # bf16-representable
        b = 0.3 * jax.random.normal(keys[2 * idx + 1], (in_nc,), dtype=jnp.float32)
        conv_ws.append(w)
        conv_bs.append(b)
        w_stack = w_stack.at[idx, :k].set(jnp.transpose(w, (2, 1, 0)))   # (k, C, O)

    # W_big[j*C + c, branch*O + o] = w_stack[branch, j, c, o]  (taps beyond k are zero)
    w_big = jnp.transpose(w_stack, (1, 2, 0, 3)).reshape(K_max * input_nc, num_k * in_nc)
    # b_big[0, branch*O + o] = bias_branch[o]   (matches torch.cat(dim=1) ordering)
    b_big = jnp.concatenate(conv_bs)[None, :]

    F = num_k * in_nc
    fc_w = _xavier_normal(keys[-2], (n_classes, F), fan_in=F, fan_out=n_classes, gain=gain)
    fc_w = fc_w.astype(jnp.bfloat16).astype(jnp.float32)
    fc_b = 0.3 * jax.random.normal(keys[-1], (n_classes,), dtype=jnp.float32)

    kernel_params = (w_big.astype(jnp.bfloat16), b_big,
                     jnp.transpose(fc_w).astype(jnp.bfloat16), fc_b)
    ref_params = (conv_ws, conv_bs, fc_w, fc_b)
    return kernel_params, ref_params


# ------------------------------ pure-JAX reference ---------------------------

def reference_forward(x_ncl, conv_ws, conv_bs, fc_w, fc_b):
    feats = []
    for w, b in zip(conv_ws, conv_bs):
        y = jax.lax.conv_general_dilated(
            x_ncl, w, window_strides=(1,), padding='VALID',
            dimension_numbers=('NCH', 'OIH', 'NCH'))
        y = y + b[None, :, None]
        feats.append(jnp.max(y, axis=2))
    x1 = jnp.concatenate(feats, axis=1)
    return jax.nn.sigmoid(x1 @ fc_w.T + fc_b[None, :])


# ---------------------------------- main -------------------------------------

if __name__ == "__main__":
    # Small config consistent with DeepGOPlus(cfg):
    #   cfg.seq_input_nc=4, cfg.seq_in_nc=32, cfg.seq_max_kernels=33, cfg.max_length=64
    input_nc, in_nc, max_kernels, seqL, n_classes, B = 4, 32, 33, 64, 16, 2
    kernels = list(range(8, max_kernels, 8))          # [8, 16, 24, 32]

    key = jax.random.PRNGKey(0)
    k_x, k_p = jax.random.split(key)
    input_seq = jax.random.normal(k_x, (B, input_nc, seqL), dtype=jnp.float32)  # NCL
    # bf16-representable input so the bf16-operand kernel and the f32 oracle see
    # identical values (remaining diff: f32 accumulation order, feats->bf16 cast,
    # approximate reciprocal).
    input_seq = input_seq.astype(jnp.bfloat16).astype(jnp.float32)

    params, ref_params = init_params(k_p, input_nc=input_nc, in_nc=in_nc,
                                     kernels=kernels, n_classes=n_classes)

    out = deepgoplus_forward(input_seq, params, kernels=kernels)
    out = jax.block_until_ready(out)

    ref = reference_forward(input_seq, *ref_params)
    assert out.shape == (B, n_classes), out.shape
    if not jnp.allclose(out, ref, rtol=5e-3, atol=5e-3):
        raise AssertionError(
            f"mismatch: max abs diff {float(jnp.max(jnp.abs(out - ref)))}")
    print("KERNEL_OK")
</pallas_src>

<mosaic_0001>
module attributes {stable_mosaic.version = 11 : i64} {
  func.func @_deepgoplus_kernel(%arg0: i32, %arg1: i32, %arg2: i32, %arg3: memref<1x95x4xf32, #tpu.memory_space<vmem>>, %arg4: memref<32x128xf32, #tpu.memory_space<vmem>>, %arg5: memref<128x128xbf16, #tpu.memory_space<vmem>>, %arg6: memref<1x128xf32, #tpu.memory_space<vmem>>, %arg7: memref<128x128xbf16, #tpu.memory_space<vmem>>, %arg8: memref<1x128xf32, #tpu.memory_space<vmem>>, %arg9: memref<1x1x128xf32, #tpu.memory_space<vmem>>, %arg10: memref<32x128xf32, #tpu.memory_space<vmem>>, %arg11: memref<1x128xf32, #tpu.memory_space<vmem>>) attributes {dimension_semantics = [#tpu.dimension_semantics<parallel>, #tpu.dimension_semantics<arbitrary>, #tpu.dimension_semantics<arbitrary>], iteration_bounds = array<i64: 2, 1, 2>, scalar_prefetch = 0 : i64, scratch_operands = 2 : i64, tpu.core_type = #tpu.core_type<tc>, window_params = [{transform_indices = @transform_0, window_bounds = array<i64: 1, 95, 4>}, {transform_indices = @transform_1, window_bounds = array<i64: 32, 128>}, {pipeline_mode = #tpu.pipeline_mode<synchronous>, transform_indices = @transform_2, window_bounds = array<i64: 128, 128>}, {pipeline_mode = #tpu.pipeline_mode<synchronous>, transform_indices = @transform_3, window_bounds = array<i64: 1, 128>}, {transform_indices = @transform_4, window_bounds = array<i64: 128, 128>}, {transform_indices = @transform_5, window_bounds = array<i64: 1, 128>}, {transform_indices = @transform_6, window_bounds = array<i64: 1, 1, 128>}]} {
    %c0_i32 = arith.constant 0 : i32
    %0 = arith.cmpi eq, %arg1, %c0_i32 : i32
    %1 = arith.extui %0 : i1 to i32
    %c0_i32_0 = arith.constant 0 : i32
    %2 = arith.cmpi ne, %1, %c0_i32_0 : i32
    scf.if %2 {
      %c0_i32_2 = arith.constant 0 : i32
      %6 = arith.cmpi eq, %arg2, %c0_i32_2 : i32
      %7 = arith.extui %6 : i1 to i32
      %c0_i32_3 = arith.constant 0 : i32
      %8 = arith.cmpi ne, %7, %c0_i32_3 : i32
      scf.if %8 {
        %cst_113 = arith.constant -1.000000e+30 : f32
        %182 = vector.broadcast %cst_113 : f32 to vector<1x128xf32>
        %c0_114 = arith.constant 0 : index
        %c0_115 = arith.constant 0 : index
        %183 = vector.load %arg11[%c0_114, %c0_115] : memref<1x128xf32, #tpu.memory_space<vmem>>, vector<1x128xf32>
        tpu.vector_store %arg11[%c0_114, %c0_115], %182 {strides = array<i32>} : memref<1x128xf32, #tpu.memory_space<vmem>>, vector<1x128xf32>,
      } else {
      }
      %c32_i32 = arith.constant 32 : i32
      %9 = arith.muli %arg2, %c32_i32 : i32
      %10 = tpu.assume_multiple %9, 32 : i32
      %c0_i32_4 = arith.constant 0 : i32
      %11 = arith.addi %10, %c0_i32_4 : i32
      %c0 = arith.constant 0 : index
      %12 = arith.index_cast %11 : i32 to index
      %c0_5 = arith.constant 0 : index
      %13 = vector.load %arg3[%c0, %12, %c0_5] : memref<1x95x4xf32, #tpu.memory_space<vmem>>, vector<1x32x4xf32>
      %14 = vector.shape_cast %13 : vector<1x32x4xf32> to vector<32x4xf32>
      %c0_6 = arith.constant 0 : index
      %c0_7 = arith.constant 0 : index
      %15 = vector.load %arg10[%c0_6, %c0_7] : memref<32x128xf32, #tpu.memory_space<vmem>>, vector<32x4xf32>
      tpu.vector_store %arg10[%c0_6, %c0_7], %14 {strides = array<i32>} : memref<32x128xf32, #tpu.memory_space<vmem>>, vector<32x4xf32>,
      %c1_i32_8 = arith.constant 1 : i32
      %16 = arith.addi %10, %c1_i32_8 : i32
      %c0_9 = arith.constant 0 : index
      %17 = arith.index_cast %16 : i32 to index
      %c0_10 = arith.constant 0 : index
      %18 = vector.load %arg3[%c0_9, %17, %c0_10] : memref<1x95x4xf32, #tpu.memory_space<vmem>>, vector<1x32x4xf32>
      %19 = vector.shape_cast %18 : vector<1x32x4xf32> to vector<32x4xf32>
      %c0_11 = arith.constant 0 : index
      %c4 = arith.constant 4 : index
      %20 = vector.load %arg10[%c0_11, %c4] : memref<32x128xf32, #tpu.memory_space<vmem>>, vector<32x4xf32>
      tpu.vector_store %arg10[%c0_11, %c4], %19 {strides = array<i32>} : memref<32x128xf32, #tpu.memory_space<vmem>>, vector<32x4xf32>,
      %c2_i32 = arith.constant 2 : i32
      %21 = arith.addi %10, %c2_i32 : i32
      %c0_12 = arith.constant 0 : index
      %22 = arith.index_cast %21 : i32 to index
      %c0_13 = arith.constant 0 : index
      %23 = vector.load %arg3[%c0_12, %22, %c0_13] : memref<1x95x4xf32, #tpu.memory_space<vmem>>, vector<1x32x4xf32>
      %24 = vector.shape_cast %23 : vector<1x32x4xf32> to vector<32x4xf32>
      %c0_14 = arith.constant 0 : index
      %c8 = arith.constant 8 : index
      %25 = vector.load %arg10[%c0_14, %c8] : memref<32x128xf32, #tpu.memory_space<vmem>>, vector<32x4xf32>
      tpu.vector_store %arg10[%c0_14, %c8], %24 {strides = array<i32>} : memref<32x128xf32, #tpu.memory_space<vmem>>, vector<32x4xf32>,
      %c3_i32 = arith.constant 3 : i32
      %26 = arith.addi %10, %c3_i32 : i32
      %c0_15 = arith.constant 0 : index
      %27 = arith.index_cast %26 : i32 to index
      %c0_16 = arith.constant 0 : index
      %28 = vector.load %arg3[%c0_15, %27, %c0_16] : memref<1x95x4xf32, #tpu.memory_space<vmem>>, vector<1x32x4xf32>
      %29 = vector.shape_cast %28 : vector<1x32x4xf32> to vector<32x4xf32>
      %c0_17 = arith.constant 0 : index
      %c12 = arith.constant 12 : index
      %30 = vector.load %arg10[%c0_17, %c12] : memref<32x128xf32, #tpu.memory_space<vmem>>, vector<32x4xf32>
      tpu.vector_store %arg10[%c0_17, %c12], %29 {strides = array<i32>} : memref<32x128xf32, #tpu.memory_space<vmem>>, vector<32x4xf32>,
      %c4_i32 = arith.constant 4 : i32
      %31 = arith.addi %10, %c4_i32 : i32
      %c0_18 = arith.constant 0 : index
      %32 = arith.index_cast %31 : i32 to index
      %c0_19 = arith.constant 0 : index
      %33 = vector.load %arg3[%c0_18, %32, %c0_19] : memref<1x95x4xf32, #tpu.memory_space<vmem>>, vector<1x32x4xf32>
      %34 = vector.shape_cast %33 : vector<1x32x4xf32> to vector<32x4xf32>
      %c0_20 = arith.constant 0 : index
      %c16 = arith.constant 16 : index
      %35 = vector.load %arg10[%c0_20, %c16] : memref<32x128xf32, #tpu.memory_space<vmem>>, vector<32x4xf32>
      tpu.vector_store %arg10[%c0_20, %c16], %34 {strides = array<i32>} : memref<32x128xf32, #tpu.memory_space<vmem>>, vector<32x4xf32>,
      %c5_i32 = arith.constant 5 : i32
      %36 = arith.addi %10, %c5_i32 : i32
      %c0_21 = arith.constant 0 : index
      %37 = arith.index_cast %36 : i32 to index
      %c0_22 = arith.constant 0 : index
      %38 = vector.load %arg3[%c0_21, %37, %c0_22] : memref<1x95x4xf32, #tpu.memory_space<vmem>>, vector<1x32x4xf32>
      %39 = vector.shape_cast %38 : vector<1x32x4xf32> to vector<32x4xf32>
      %c0_23 = arith.constant 0 : index
      %c20 = arith.constant 20 : index
      %40 = vector.load %arg10[%c0_23, %c20] : memref<32x128xf32, #tpu.memory_space<vmem>>, vector<32x4xf32>
      tpu.vector_store %arg10[%c0_23, %c20], %39 {strides = array<i32>} : memref<32x128xf32, #tpu.memory_space<vmem>>, vector<32x4xf32>,
      %c6_i32 = arith.constant 6 : i32
      %41 = arith.addi %10, %c6_i32 : i32
      %c0_24 = arith.constant 0 : index
      %42 = arith.index_cast %41 : i32 to index
      %c0_25 = arith.constant 0 : index
      %43 = vector.load %arg3[%c0_24, %42, %c0_25] : memref<1x95x4xf32, #tpu.memory_space<vmem>>, vector<1x32x4xf32>
      %44 = vector.shape_cast %43 : vector<1x32x4xf32> to vector<32x4xf32>
      %c0_26 = arith.constant 0 : index
      %c24 = arith.constant 24 : index
      %45 = vector.load %arg10[%c0_26, %c24] : memref<32x128xf32, #tpu.memory_space<vmem>>, vector<32x4xf32>
      tpu.vector_store %arg10[%c0_26, %c24], %44 {strides = array<i32>} : memref<32x128xf32, #tpu.memory_space<vmem>>, vector<32x4xf32>,
      %c7_i32 = arith.constant 7 : i32
      %46 = arith.addi %10, %c7_i32 : i32
      %c0_27 = arith.constant 0 : index
      %47 = arith.index_cast %46 : i32 to index
      %c0_28 = arith.constant 0 : index
      %48 = vector.load %arg3[%c0_27, %47, %c0_28] : memref<1x95x4xf32, #tpu.memory_space<vmem>>, vector<1x32x4xf32>
      %49 = vector.shape_cast %48 : vector<1x32x4xf32> to vector<32x4xf32>
      %c0_29 = arith.constant 0 : index
      %c28 = arith.constant 28 : index
      %50 = vector.load %arg10[%c0_29, %c28] : memref<32x128xf32, #tpu.memory_space<vmem>>, vector<32x4xf32>
      tpu.vector_store %arg10[%c0_29, %c28], %49 {strides = array<i32>} : memref<32x128xf32, #tpu.memory_space<vmem>>, vector<32x4xf32>,
      %c8_i32 = arith.constant 8 : i32
      %51 = arith.addi %10, %c8_i32 : i32
      %c0_30 = arith.constant 0 : index
      %52 = arith.index_cast %51 : i32 to index
      %c0_31 = arith.constant 0 : index
      %53 = vector.load %arg3[%c0_30, %52, %c0_31] : memref<1x95x4xf32, #tpu.memory_space<vmem>>, vector<1x32x4xf32>
      %54 = vector.shape_cast %53 : vector<1x32x4xf32> to vector<32x4xf32>
      %c0_32 = arith.constant 0 : index
      %c32 = arith.constant 32 : index
      %55 = vector.load %arg10[%c0_32, %c32] : memref<32x128xf32, #tpu.memory_space<vmem>>, vector<32x4xf32>
      tpu.vector_store %arg10[%c0_32, %c32], %54 {strides = array<i32>} : memref<32x128xf32, #tpu.memory_space<vmem>>, vector<32x4xf32>,
      %c9_i32 = arith.constant 9 : i32
      %56 = arith.addi %10, %c9_i32 : i32
      %c0_33 = arith.constant 0 : index
      %57 = arith.index_cast %56 : i32 to index
      %c0_34 = arith.constant 0 : index
      %58 = vector.load %arg3[%c0_33, %57, %c0_34] : memref<1x95x4xf32, #tpu.memory_space<vmem>>, vector<1x32x4xf32>
      %59 = vector.shape_cast %58 : vector<1x32x4xf32> to vector<32x4xf32>
      %c0_35 = arith.constant 0 : index
      %c36 = arith.constant 36 : index
      %60 = vector.load %arg10[%c0_35, %c36] : memref<32x128xf32, #tpu.memory_space<vmem>>, vector<32x4xf32>
      tpu.vector_store %arg10[%c0_35, %c36], %59 {strides = array<i32>} : memref<32x128xf32, #tpu.memory_space<vmem>>, vector<32x4xf32>,
      %c10_i32 = arith.constant 10 : i32
      %61 = arith.addi %10, %c10_i32 : i32
      %c0_36 = arith.constant 0 : index
      %62 = arith.index_cast %61 : i32 to index
      %c0_37 = arith.constant 0 : index
      %63 = vector.load %arg3[%c0_36, %62, %c0_37] : memref<1x95x4xf32, #tpu.memory_space<vmem>>, vector<1x32x4xf32>
      %64 = vector.shape_cast %63 : vector<1x32x4xf32> to vector<32x4xf32>
      %c0_38 = arith.constant 0 : index
      %c40 = arith.constant 40 : index
      %65 = vector.load %arg10[%c0_38, %c40] : memref<32x128xf32, #tpu.memory_space<vmem>>, vector<32x4xf32>
      tpu.vector_store %arg10[%c0_38, %c40], %64 {strides = array<i32>} : memref<32x128xf32, #tpu.memory_space<vmem>>, vector<32x4xf32>,
      %c11_i32 = arith.constant 11 : i32
      %66 = arith.addi %10, %c11_i32 : i32
      %c0_39 = arith.constant 0 : index
      %67 = arith.index_cast %66 : i32 to index
      %c0_40 = arith.constant 0 : index
      %68 = vector.load %arg3[%c0_39, %67, %c0_40] : memref<1x95x4xf32, #tpu.memory_space<vmem>>, vector<1x32x4xf32>
      %69 = vector.shape_cast %68 : vector<1x32x4xf32> to vector<32x4xf32>
      %c0_41 = arith.constant 0 : index
      %c44 = arith.constant 44 : index
      %70 = vector.load %arg10[%c0_41, %c44] : memref<32x128xf32, #tpu.memory_space<vmem>>, vector<32x4xf32>
      tpu.vector_store %arg10[%c0_41, %c44], %69 {strides = array<i32>} : memref<32x128xf32, #tpu.memory_space<vmem>>, vector<32x4xf32>,
      %c12_i32 = arith.constant 12 : i32
      %71 = arith.addi %10, %c12_i32 : i32
      %c0_42 = arith.constant 0 : index
      %72 = arith.index_cast %71 : i32 to index
      %c0_43 = arith.constant 0 : index
      %73 = vector.load %arg3[%c0_42, %72, %c0_43] : memref<1x95x4xf32, #tpu.memory_space<vmem>>, vector<1x32x4xf32>
      %74 = vector.shape_cast %73 : vector<1x32x4xf32> to vector<32x4xf32>
      %c0_44 = arith.constant 0 : index
      %c48 = arith.constant 48 : index
      %75 = vector.load %arg10[%c0_44, %c48] : memref<32x128xf32, #tpu.memory_space<vmem>>, vector<32x4xf32>
      tpu.vector_store %arg10[%c0_44, %c48], %74 {strides = array<i32>} : memref<32x128xf32, #tpu.memory_space<vmem>>, vector<32x4xf32>,
      %c13_i32 = arith.constant 13 : i32
      %76 = arith.addi %10, %c13_i32 : i32
      %c0_45 = arith.constant 0 : index
      %77 = arith.index_cast %76 : i32 to index
      %c0_46 = arith.constant 0 : index
      %78 = vector.load %arg3[%c0_45, %77, %c0_46] : memref<1x95x4xf32, #tpu.memory_space<vmem>>, vector<1x32x4xf32>
      %79 = vector.shape_cast %78 : vector<1x32x4xf32> to vector<32x4xf32>
      %c0_47 = arith.constant 0 : index
      %c52 = arith.constant 52 : index
      %80 = vector.load %arg10[%c0_47, %c52] : memref<32x128xf32, #tpu.memory_space<vmem>>, vector<32x4xf32>
      tpu.vector_store %arg10[%c0_47, %c52], %79 {strides = array<i32>} : memref<32x128xf32, #tpu.memory_space<vmem>>, vector<32x4xf32>,
      %c14_i32 = arith.constant 14 : i32
      %81 = arith.addi %10, %c14_i32 : i32
      %c0_48 = arith.constant 0 : index
      %82 = arith.index_cast %81 : i32 to index
      %c0_49 = arith.constant 0 : index
      %83 = vector.load %arg3[%c0_48, %82, %c0_49] : memref<1x95x4xf32, #tpu.memory_space<vmem>>, vector<1x32x4xf32>
      %84 = vector.shape_cast %83 : vector<1x32x4xf32> to vector<32x4xf32>
      %c0_50 = arith.constant 0 : index
      %c56 = arith.constant 56 : index
      %85 = vector.load %arg10[%c0_50, %c56] : memref<32x128xf32, #tpu.memory_space<vmem>>, vector<32x4xf32>
      tpu.vector_store %arg10[%c0_50, %c56], %84 {strides = array<i32>} : memref<32x128xf32, #tpu.memory_space<vmem>>, vector<32x4xf32>,
      %c15_i32 = arith.constant 15 : i32
      %86 = arith.addi %10, %c15_i32 : i32
      %c0_51 = arith.constant 0 : index
      %87 = arith.index_cast %86 : i32 to index
      %c0_52 = arith.constant 0 : index
      %88 = vector.load %arg3[%c0_51, %87, %c0_52] : memref<1x95x4xf32, #tpu.memory_space<vmem>>, vector<1x32x4xf32>
      %89 = vector.shape_cast %88 : vector<1x32x4xf32> to vector<32x4xf32>
      %c0_53 = arith.constant 0 : index
      %c60 = arith.constant 60 : index
      %90 = vector.load %arg10[%c0_53, %c60] : memref<32x128xf32, #tpu.memory_space<vmem>>, vector<32x4xf32>
      tpu.vector_store %arg10[%c0_53, %c60], %89 {strides = array<i32>} : memref<32x128xf32, #tpu.memory_space<vmem>>, vector<32x4xf32>,
      %c16_i32 = arith.constant 16 : i32
      %91 = arith.addi %10, %c16_i32 : i32
      %c0_54 = arith.constant 0 : index
      %92 = arith.index_cast %91 : i32 to index
      %c0_55 = arith.constant 0 : index
      %93 = vector.load %arg3[%c0_54, %92, %c0_55] : memref<1x95x4xf32, #tpu.memory_space<vmem>>, vector<1x32x4xf32>
      %94 = vector.shape_cast %93 : vector<1x32x4xf32> to vector<32x4xf32>
      %c0_56 = arith.constant 0 : index
      %c64 = arith.constant 64 : index
      %95 = vector.load %arg10[%c0_56, %c64] : memref<32x128xf32, #tpu.memory_space<vmem>>, vector<32x4xf32>
      tpu.vector_store %arg10[%c0_56, %c64], %94 {strides = array<i32>} : memref<32x128xf32, #tpu.memory_space<vmem>>, vector<32x4xf32>,
      %c17_i32 = arith.constant 17 : i32
      %96 = arith.addi %10, %c17_i32 : i32
      %c0_57 = arith.constant 0 : index
      %97 = arith.index_cast %96 : i32 to index
      %c0_58 = arith.constant 0 : index
      %98 = vector.load %arg3[%c0_57, %97, %c0_58] : memref<1x95x4xf32, #tpu.memory_space<vmem>>, vector<1x32x4xf32>
      %99 = vector.shape_cast %98 : vector<1x32x4xf32> to vector<32x4xf32>
      %c0_59 = arith.constant 0 : index
      %c68 = arith.constant 68 : index
      %100 = vector.load %arg10[%c0_59, %c68] : memref<32x128xf32, #tpu.memory_space<vmem>>, vector<32x4xf32>
      tpu.vector_store %arg10[%c0_59, %c68], %99 {strides = array<i32>} : memref<32x128xf32, #tpu.memory_space<vmem>>, vector<32x4xf32>,
      %c18_i32 = arith.constant 18 : i32
      %101 = arith.addi %10, %c18_i32 : i32
      %c0_60 = arith.constant 0 : index
      %102 = arith.index_cast %101 : i32 to index
      %c0_61 = arith.constant 0 : index
      %103 = vector.load %arg3[%c0_60, %102, %c0_61] : memref<1x95x4xf32, #tpu.memory_space<vmem>>, vector<1x32x4xf32>
      %104 = vector.shape_cast %103 : vector<1x32x4xf32> to vector<32x4xf32>
      %c0_62 = arith.constant 0 : index
      %c72 = arith.constant 72 : index
      %105 = vector.load %arg10[%c0_62, %c72] : memref<32x128xf32, #tpu.memory_space<vmem>>, vector<32x4xf32>
      tpu.vector_store %arg10[%c0_62, %c72], %104 {strides = array<i32>} : memref<32x128xf32, #tpu.memory_space<vmem>>, vector<32x4xf32>,
      %c19_i32 = arith.constant 19 : i32
      %106 = arith.addi %10, %c19_i32 : i32
      %c0_63 = arith.constant 0 : index
      %107 = arith.index_cast %106 : i32 to index
      %c0_64 = arith.constant 0 : index
      %108 = vector.load %arg3[%c0_63, %107, %c0_64] : memref<1x95x4xf32, #tpu.memory_space<vmem>>, vector<1x32x4xf32>
      %109 = vector.shape_cast %108 : vector<1x32x4xf32> to vector<32x4xf32>
      %c0_65 = arith.constant 0 : index
      %c76 = arith.constant 76 : index
      %110 = vector.load %arg10[%c0_65, %c76] : memref<32x128xf32, #tpu.memory_space<vmem>>, vector<32x4xf32>
      tpu.vector_store %arg10[%c0_65, %c76], %109 {strides = array<i32>} : memref<32x128xf32, #tpu.memory_space<vmem>>, vector<32x4xf32>,
      %c20_i32 = arith.constant 20 : i32
      %111 = arith.addi %10, %c20_i32 : i32
      %c0_66 = arith.constant 0 : index
      %112 = arith.index_cast %111 : i32 to index
      %c0_67 = arith.constant 0 : index
      %113 = vector.load %arg3[%c0_66, %112, %c0_67] : memref<1x95x4xf32, #tpu.memory_space<vmem>>, vector<1x32x4xf32>
      %114 = vector.shape_cast %113 : vector<1x32x4xf32> to vector<32x4xf32>
      %c0_68 = arith.constant 0 : index
      %c80 = arith.constant 80 : index
      %115 = vector.load %arg10[%c0_68, %c80] : memref<32x128xf32, #tpu.memory_space<vmem>>, vector<32x4xf32>
      tpu.vector_store %arg10[%c0_68, %c80], %114 {strides = array<i32>} : memref<32x128xf32, #tpu.memory_space<vmem>>, vector<32x4xf32>,
      %c21_i32 = arith.constant 21 : i32
      %116 = arith.addi %10, %c21_i32 : i32
      %c0_69 = arith.constant 0 : index
      %117 = arith.index_cast %116 : i32 to index
      %c0_70 = arith.constant 0 : index
      %118 = vector.load %arg3[%c0_69, %117, %c0_70] : memref<1x95x4xf32, #tpu.memory_space<vmem>>, vector<1x32x4xf32>
      %119 = vector.shape_cast %118 : vector<1x32x4xf32> to vector<32x4xf32>
      %c0_71 = arith.constant 0 : index
      %c84 = arith.constant 84 : index
      %120 = vector.load %arg10[%c0_71, %c84] : memref<32x128xf32, #tpu.memory_space<vmem>>, vector<32x4xf32>
      tpu.vector_store %arg10[%c0_71, %c84], %119 {strides = array<i32>} : memref<32x128xf32, #tpu.memory_space<vmem>>, vector<32x4xf32>,
      %c22_i32 = arith.constant 22 : i32
      %121 = arith.addi %10, %c22_i32 : i32
      %c0_72 = arith.constant 0 : index
      %122 = arith.index_cast %121 : i32 to index
      %c0_73 = arith.constant 0 : index
      %123 = vector.load %arg3[%c0_72, %122, %c0_73] : memref<1x95x4xf32, #tpu.memory_space<vmem>>, vector<1x32x4xf32>
      %124 = vector.shape_cast %123 : vector<1x32x4xf32> to vector<32x4xf32>
      %c0_74 = arith.constant 0 : index
      %c88 = arith.constant 88 : index
      %125 = vector.load %arg10[%c0_74, %c88] : memref<32x128xf32, #tpu.memory_space<vmem>>, vector<32x4xf32>
      tpu.vector_store %arg10[%c0_74, %c88], %124 {strides = array<i32>} : memref<32x128xf32, #tpu.memory_space<vmem>>, vector<32x4xf32>,
      %c23_i32 = arith.constant 23 : i32
      %126 = arith.addi %10, %c23_i32 : i32
      %c0_75 = arith.constant 0 : index
      %127 = arith.index_cast %126 : i32 to index
      %c0_76 = arith.constant 0 : index
      %128 = vector.load %arg3[%c0_75, %127, %c0_76] : memref<1x95x4xf32, #tpu.memory_space<vmem>>, vector<1x32x4xf32>
      %129 = vector.shape_cast %128 : vector<1x32x4xf32> to vector<32x4xf32>
      %c0_77 = arith.constant 0 : index
      %c92 = arith.constant 92 : index
      %130 = vector.load %arg10[%c0_77, %c92] : memref<32x128xf32, #tpu.memory_space<vmem>>, vector<32x4xf32>
      tpu.vector_store %arg10[%c0_77, %c92], %129 {strides = array<i32>} : memref<32x128xf32, #tpu.memory_space<vmem>>, vector<32x4xf32>,
      %c24_i32 = arith.constant 24 : i32
      %131 = arith.addi %10, %c24_i32 : i32
      %c0_78 = arith.constant 0 : index
      %132 = arith.index_cast %131 : i32 to index
      %c0_79 = arith.constant 0 : index
      %133 = vector.load %arg3[%c0_78, %132, %c0_79] : memref<1x95x4xf32, #tpu.memory_space<vmem>>, vector<1x32x4xf32>
      %134 = vector.shape_cast %133 : vector<1x32x4xf32> to vector<32x4xf32>
      %c0_80 = arith.constant 0 : index
      %c96 = arith.constant 96 : index
      %135 = vector.load %arg10[%c0_80, %c96] : memref<32x128xf32, #tpu.memory_space<vmem>>, vector<32x4xf32>
      tpu.vector_store %arg10[%c0_80, %c96], %134 {strides = array<i32>} : memref<32x128xf32, #tpu.memory_space<vmem>>, vector<32x4xf32>,
      %c25_i32 = arith.constant 25 : i32
      %136 = arith.addi %10, %c25_i32 : i32
      %c0_81 = arith.constant 0 : index
      %137 = arith.index_cast %136 : i32 to index
      %c0_82 = arith.constant 0 : index
      %138 = vector.load %arg3[%c0_81, %137, %c0_82] : memref<1x95x4xf32, #tpu.memory_space<vmem>>, vector<1x32x4xf32>
      %139 = vector.shape_cast %138 : vector<1x32x4xf32> to vector<32x4xf32>
      %c0_83 = arith.constant 0 : index
      %c100 = arith.constant 100 : index
      %140 = vector.load %arg10[%c0_83, %c100] : memref<32x128xf32, #tpu.memory_space<vmem>>, vector<32x4xf32>
      tpu.vector_store %arg10[%c0_83, %c100], %139 {strides = array<i32>} : memref<32x128xf32, #tpu.memory_space<vmem>>, vector<32x4xf32>,
      %c26_i32 = arith.constant 26 : i32
      %141 = arith.addi %10, %c26_i32 : i32
      %c0_84 = arith.constant 0 : index
      %142 = arith.index_cast %141 : i32 to index
      %c0_85 = arith.constant 0 : index
      %143 = vector.load %arg3[%c0_84, %142, %c0_85] : memref<1x95x4xf32, #tpu.memory_space<vmem>>, vector<1x32x4xf32>
      %144 = vector.shape_cast %143 : vector<1x32x4xf32> to vector<32x4xf32>
      %c0_86 = arith.constant 0 : index
      %c104 = arith.constant 104 : index
      %145 = vector.load %arg10[%c0_86, %c104] : memref<32x128xf32, #tpu.memory_space<vmem>>, vector<32x4xf32>
      tpu.vector_store %arg10[%c0_86, %c104], %144 {strides = array<i32>} : memref<32x128xf32, #tpu.memory_space<vmem>>, vector<32x4xf32>,
      %c27_i32 = arith.constant 27 : i32
      %146 = arith.addi %10, %c27_i32 : i32
      %c0_87 = arith.constant 0 : index
      %147 = arith.index_cast %146 : i32 to index
      %c0_88 = arith.constant 0 : index
      %148 = vector.load %arg3[%c0_87, %147, %c0_88] : memref<1x95x4xf32, #tpu.memory_space<vmem>>, vector<1x32x4xf32>
      %149 = vector.shape_cast %148 : vector<1x32x4xf32> to vector<32x4xf32>
      %c0_89 = arith.constant 0 : index
      %c108 = arith.constant 108 : index
      %150 = vector.load %arg10[%c0_89, %c108] : memref<32x128xf32, #tpu.memory_space<vmem>>, vector<32x4xf32>
      tpu.vector_store %arg10[%c0_89, %c108], %149 {strides = array<i32>} : memref<32x128xf32, #tpu.memory_space<vmem>>, vector<32x4xf32>,
      %c28_i32 = arith.constant 28 : i32
      %151 = arith.addi %10, %c28_i32 : i32
      %c0_90 = arith.constant 0 : index
      %152 = arith.index_cast %151 : i32 to index
      %c0_91 = arith.constant 0 : index
      %153 = vector.load %arg3[%c0_90, %152, %c0_91] : memref<1x95x4xf32, #tpu.memory_space<vmem>>, vector<1x32x4xf32>
      %154 = vector.shape_cast %153 : vector<1x32x4xf32> to vector<32x4xf32>
      %c0_92 = arith.constant 0 : index
      %c112 = arith.constant 112 : index
      %155 = vector.load %arg10[%c0_92, %c112] : memref<32x128xf32, #tpu.memory_space<vmem>>, vector<32x4xf32>
      tpu.vector_store %arg10[%c0_92, %c112], %154 {strides = array<i32>} : memref<32x128xf32, #tpu.memory_space<vmem>>, vector<32x4xf32>,
      %c29_i32 = arith.constant 29 : i32
      %156 = arith.addi %10, %c29_i32 : i32
      %c0_93 = arith.constant 0 : index
      %157 = arith.index_cast %156 : i32 to index
      %c0_94 = arith.constant 0 : index
      %158 = vector.load %arg3[%c0_93, %157, %c0_94] : memref<1x95x4xf32, #tpu.memory_space<vmem>>, vector<1x32x4xf32>
      %159 = vector.shape_cast %158 : vector<1x32x4xf32> to vector<32x4xf32>
      %c0_95 = arith.constant 0 : index
      %c116 = arith.constant 116 : index
      %160 = vector.load %arg10[%c0_95, %c116] : memref<32x128xf32, #tpu.memory_space<vmem>>, vector<32x4xf32>
      tpu.vector_store %arg10[%c0_95, %c116], %159 {strides = array<i32>} : memref<32x128xf32, #tpu.memory_space<vmem>>, vector<32x4xf32>,
      %c30_i32 = arith.constant 30 : i32
      %161 = arith.addi %10, %c30_i32 : i32
      %c0_96 = arith.constant 0 : index
      %162 = arith.index_cast %161 : i32 to index
      %c0_97 = arith.constant 0 : index
      %163 = vector.load %arg3[%c0_96, %162, %c0_97] : memref<1x95x4xf32, #tpu.memory_space<vmem>>, vector<1x32x4xf32>
      %164 = vector.shape_cast %163 : vector<1x32x4xf32> to vector<32x4xf32>
      %c0_98 = arith.constant 0 : index
      %c120 = arith.constant 120 : index
      %165 = vector.load %arg10[%c0_98, %c120] : memref<32x128xf32, #tpu.memory_space<vmem>>, vector<32x4xf32>
      tpu.vector_store %arg10[%c0_98, %c120], %164 {strides = array<i32>} : memref<32x128xf32, #tpu.memory_space<vmem>>, vector<32x4xf32>,
      %c31_i32 = arith.constant 31 : i32
      %166 = arith.addi %10, %c31_i32 : i32
      %c0_99 = arith.constant 0 : index
      %167 = arith.index_cast %166 : i32 to index
      %c0_100 = arith.constant 0 : index
      %168 = vector.load %arg3[%c0_99, %167, %c0_100] : memref<1x95x4xf32, #tpu.memory_space<vmem>>, vector<1x32x4xf32>
      %169 = vector.shape_cast %168 : vector<1x32x4xf32> to vector<32x4xf32>
      %c0_101 = arith.constant 0 : index
      %c124 = arith.constant 124 : index
      %170 = vector.load %arg10[%c0_101, %c124] : memref<32x128xf32, #tpu.memory_space<vmem>>, vector<32x4xf32>
      tpu.vector_store %arg10[%c0_101, %c124], %169 {strides = array<i32>} : memref<32x128xf32, #tpu.memory_space<vmem>>, vector<32x4xf32>,
      %c0_102 = arith.constant 0 : index
      %c0_103 = arith.constant 0 : index
      %171 = vector.load %arg10[%c0_102, %c0_103] : memref<32x128xf32, #tpu.memory_space<vmem>>, vector<32x128xf32>
      %172 = arith.truncf %171 : vector<32x128xf32> to vector<32x128xbf16>
      %c0_104 = arith.constant 0 : index
      %c0_105 = arith.constant 0 : index
      %173 = vector.load %arg5[%c0_104, %c0_105] : memref<128x128xbf16, #tpu.memory_space<vmem>>, vector<128x128xbf16>
      %cst = arith.constant dense<0.000000e+00> : vector<32x128xf32>
      %174 = tpu.matmul %172, %173, %cst {dimension_numbers = #tpu.dot_dimension_numbers<[1], [0], [0], [1], [0, 0, 1, 1], [], []>} : vector<32x128xbf16>, vector<128x128xbf16>, vector<32x128xf32> -> vector<32x128xf32>
      %c0_106 = arith.constant 0 : index
      %c0_107 = arith.constant 0 : index
      %175 = vector.load %arg4[%c0_106, %c0_107] : memref<32x128xf32, #tpu.memory_space<vmem>>, vector<32x128xf32>
      %176 = arith.addf %174, %175 : vector<32x128xf32>
      %c0_108 = arith.constant 0 : index
      %c0_109 = arith.constant 0 : index
      %177 = vector.load %arg11[%c0_108, %c0_109] : memref<1x128xf32, #tpu.memory_space<vmem>>, vector<1x128xf32>
      %cst_110 = arith.constant dense<0xFF800000> : vector<128xf32>
      %178 = vector.multi_reduction <maximumf>, %176, %cst_110 [0] : vector<32x128xf32> to vector<128xf32>
      %179 = vector.shape_cast %178 : vector<128xf32> to vector<1x128xf32>
      %180 = arith.maximumf %177, %179 : vector<1x128xf32>
      %c0_111 = arith.constant 0 : index
      %c0_112 = arith.constant 0 : index
      %181 = vector.load %arg11[%c0_111, %c0_112] : memref<1x128xf32, #tpu.memory_space<vmem>>, vector<1x128xf32>
      tpu.vector_store %arg11[%c0_111, %c0_112], %180 {strides = array<i32>} : memref<1x128xf32, #tpu.memory_space<vmem>>, vector<1x128xf32>,
    } else {
    }
    %c1_i32 = arith.constant 1 : i32
    %3 = arith.cmpi eq, %arg2, %c1_i32 : i32
    %4 = arith.extui %3 : i1 to i32
    %c0_i32_1 = arith.constant 0 : i32
    %5 = arith.cmpi ne, %4, %c0_i32_1 : i32
    scf.if %5 {
      %c0 = arith.constant 0 : index
      %c0_2 = arith.constant 0 : index
      %6 = vector.load %arg11[%c0, %c0_2] : memref<1x128xf32, #tpu.memory_space<vmem>>, vector<1x128xf32>
      %c0_3 = arith.constant 0 : index
      %c0_4 = arith.constant 0 : index
      %7 = vector.load %arg6[%c0_3, %c0_4] : memref<1x128xf32, #tpu.memory_space<vmem>>, vector<1x128xf32>
      %8 = arith.addf %6, %7 : vector<1x128xf32>
      %9 = arith.truncf %8 : vector<1x128xf32> to vector<1x128xbf16>
      %c0_5 = arith.constant 0 : index
      %c0_6 = arith.constant 0 : index
      %10 = vector.load %arg7[%c0_5, %c0_6] : memref<128x128xbf16, #tpu.memory_space<vmem>>, vector<128x128xbf16>
      %cst = arith.constant dense<0.000000e+00> : vector<1x128xf32>
      %11 = tpu.matmul %9, %10, %cst {dimension_numbers = #tpu.dot_dimension_numbers<[1], [0], [0], [1], [0, 0, 1, 1], [], []>} : vector<1x128xbf16>, vector<128x128xbf16>, vector<1x128xf32> -> vector<1x128xf32>
      %c0_7 = arith.constant 0 : index
      %c0_8 = arith.constant 0 : index
      %12 = vector.load %arg8[%c0_7, %c0_8] : memref<1x128xf32, #tpu.memory_space<vmem>>, vector<1x128xf32>
      %13 = arith.addf %11, %12 : vector<1x128xf32>
      %cst_9 = arith.constant 0.000000e+00 : f32
      %14 = vector.broadcast %cst_9 : f32 to vector<1x128xf32>
      %15 = arith.subf %14, %13 : vector<1x128xf32>
      %16 = math.exp %15 : vector<1x128xf32>
      %cst_10 = arith.constant 1.000000e+00 : f32
      %17 = vector.broadcast %cst_10 : f32 to vector<1x128xf32>
      %18 = arith.addf %17, %16 : vector<1x128xf32>
      %19 = tpu.reciprocal %18 {approx = true} : vector<1x128xf32> -> vector<1x128xf32>
      %c0_11 = arith.constant 0 : index
      %c0_12 = arith.constant 0 : index
      %c0_13 = arith.constant 0 : index
      %20 = vector.load %arg9[%c0_11, %c0_12, %c0_13] : memref<1x1x128xf32, #tpu.memory_space<vmem>>, vector<1x1x128xf32>
      %21 = vector.shape_cast %20 : vector<1x1x128xf32> to vector<1x128xf32>
      %22 = vector.shape_cast %19 : vector<1x128xf32> to vector<1x1x128xf32>
      tpu.vector_store %arg9[%c0_11, %c0_12, %c0_13], %22 {strides = array<i32>} : memref<1x1x128xf32, #tpu.memory_space<vmem>>, vector<1x1x128xf32>,
    } else {
    }
    return
  }
  func.func @transform_0(%arg0: i32, %arg1: i32, %arg2: i32) -> (i32, i32, i32) {
    %c0_i32 = arith.constant 0 : i32
    %c0_i32_0 = arith.constant 0 : i32
    %c0_i32_1 = arith.constant 0 : i32
    return %arg0, %c0_i32, %c0_i32_0 : i32, i32, i32
  }
  func.func @transform_1(%arg0: i32, %arg1: i32, %arg2: i32) -> (i32, i32) {
    %c0_i32 = arith.constant 0 : i32
    %c0_i32_0 = arith.constant 0 : i32
    return %arg2, %c0_i32 : i32, i32
  }
  func.func @transform_2(%arg0: i32, %arg1: i32, %arg2: i32) -> (i32, i32) {
    %c0_i32 = arith.constant 0 : i32
    %c0_i32_0 = arith.constant 0 : i32
    %c0_i32_1 = arith.constant 0 : i32
    return %c0_i32, %c0_i32_0 : i32, i32
  }
  func.func @transform_3(%arg0: i32, %arg1: i32, %arg2: i32) -> (i32, i32) {
    %c0_i32 = arith.constant 0 : i32
    %c0_i32_0 = arith.constant 0 : i32
    %c0_i32_1 = arith.constant 0 : i32
    return %c0_i32, %c0_i32_0 : i32, i32
  }
  func.func @transform_4(%arg0: i32, %arg1: i32, %arg2: i32) -> (i32, i32) {
    %c0_i32 = arith.constant 0 : i32
    %c0_i32_0 = arith.constant 0 : i32
    return %c0_i32, %arg1 : i32, i32
  }
  func.func @transform_5(%arg0: i32, %arg1: i32, %arg2: i32) -> (i32, i32) {
    %c0_i32 = arith.constant 0 : i32
    %c0_i32_0 = arith.constant 0 : i32
    return %c0_i32, %arg1 : i32, i32
  }
  func.func @transform_6(%arg0: i32, %arg1: i32, %arg2: i32) -> (i32, i32, i32) {
    %c0_i32 = arith.constant 0 : i32
    %c0_i32_0 = arith.constant 0 : i32
    return %arg0, %c0_i32, %arg1 : i32, i32, i32
  }
}

</mosaic_0001>

<bundles_post_ra>
// kernel: tpu_custom_call.1
= control target key start
LH: loop header
LB: loop body
LE: loop exit
PB: predicated region body
PF: predicated region fallthrough
CT: control target
= control target key end

     0   :  { %11 = vsyncpa [#allocation5], 0  ;;  %s2629_s0 = inlined_call_operand.vmem [shape: f32[2,95,4], index: 0, kind: input, shape index: {}]   ;;  %s2630_s1 = inlined_call_operand.vmem [shape: f32[64,128], index: 1, kind: input, shape index: {}]   ;;  %s2631_s2 = inlined_call_operand.vmem [shape: bf16[128,128], index: 2, kind: input, shape index: {}]   ;;  %s2632_s3 = inlined_call_operand.vmem [shape: f32[1,128], index: 3, kind: input, shape index: {}]   ;;  %s2633_s4 = inlined_call_operand.vmem [shape: bf16[128,128], index: 4, kind: input, shape index: {}]   ;;  %s2634_s5 = inlined_call_operand.vmem [shape: f32[1,128], index: 5, kind: input, shape index: {}]   ;;  %s2635_s6 = inlined_call_operand.hbm [shape: f32[2,1,128], index: 6, kind: output, shape index: {}]  }
   0x1   :  { %13 = vsyncpa [#allocation5 + $0x1], 0  ;;  %s2189_s21 = smov 0   ;;  %s2191_s22 = smov 0  }
   0x2   :  { %s2193_s23 = smov 0   ;;  %s2195_s24 = smov 0  }
   0x3   :  { %s2197_s25 = smov 0   ;;  %s2199_s26 = smov 0  }
   0x4   :  { %s2201_s27 = smov 0   ;;  %s2203_s28 = smov 0  }
   0x5 LB: > { %s1653_s29 = sadd.s32 4294967295, %s2117_s28   ;;  %s1654_s30 = sadd.s32 4294967294, %s2117_s28   ;;  %s2117_s28 = sphi %s2203_s28, %s19_s28   ;;  %s2113_s27 = sphi %s2201_s27, %s2649_s27   ;;  %s2109_s26 = sphi %s2199_s26, %s2648_s26   ;;  %s2105_s25 = sphi %s2197_s25, %s2647_s25   ;;  %s2101_s24 = sphi %s2195_s24, %s2646_s24   ;;  %s2097_s23 = sphi %s2193_s23, %s2645_s23   ;;  %s2093_s22 = sphi %s2191_s22, %s2644_s22   ;;  %s2089_s21 = sphi %s2189_s21, %s2643_s21  }
   0x6   : > { %s31_s7 = sadd.s32 1, %s2109_s26  ;;  %s38_s8 = sadd.s32 1, %s2113_s27 }
   0x7   : > { %p32_p0 = scmp.ge.s32.totalorder %s31_s7, 2  ;;  %p203_p1 = scmp.ne.s32.totalorder %s2097_s23, %s2093_s22 }
   0x8   : > { %p204_p2 = scmp.eq.s32.totalorder %s1653_s29, 3  ;;  %p209_p4 = scmp.ne.s32.totalorder %s2093_s22, %s2089_s21 }
   0x9   : > { %s2651_s7 = smov (%p32_p0, %s31_s7), 0  ;;  %s2653_s8 = smov (!%p32_p0, %s38_s8), %s2113_s27 }
   0xa   : > { %2637 = sst [smem:[#allocation7_spill]] %s2651_s7  ;;  %p2238_p3 = por %p204_p2, %p203_p1 }
   0xb   : > { %p40_p5 = scmp.ge.s32.totalorder %s2653_s8, 2  ;;  %p210_p6 = scmp.eq.s32.totalorder %s1654_s30, 3 }
   0xc   : > { %p1659_p7 = scmp.ge.s32.totalorder %s2117_s28, 1  ;;  %p264_p8 = scmp.lt.s32.totalorder %s2117_s28, 5 }
   0xd   : > { %s2655_s8 = smov (%p40_p5, %s2653_s8), 0  ;;  %p2248_p9 = por %p210_p6, %p209_p4 }
   0xe   : > { %2639 = sst [smem:[#allocation8_spill]] %s2655_s8  ;;  %p265_p10 = pnand %p1659_p7, %p264_p8 }
   0xf   : > { %s188_s11 = ssub.s32 %s2113_s27, %s2655_s8  ;;  %s193_s12 = sadd.s32 1, %s2097_s23 }
  0x10   : > { %p191_p11 = scmp.eq.s32.totalorder %s188_s11, 0  ;;  %268 = sbr.rel (%p265_p10) target bundleno = 907 (0x38b), region = 44 }
  0x11   : > { %s303_s14 = sand.u32 (!%p265_p10), 1, %s2093_s22   ;;  %p305_p12 = scmp.lt.s32.totalorder (!%p265_p10), %s2105_s25, 1 }
  0x12   : > { %s2256_s13 = scalar_select %p191_p11, %s2097_s23, %s193_s12  }
  0x13   : > { %s1661_s15 = sshll.u32 (!%p265_p10), %s2101_s24, 2  ;;  %s2272_s8 = scalar_lea.vmem (!%p265_p10), [#allocation4], %s303_s14 }
  0x14   : > { %p311_p13 = scmp.lt.s32.totalorder (!%p265_p10), %s1661_s15, 7  ;;  %p1663_p0 = scmp.ne.s32.totalorder (!%p265_p10), %s2101_s24, 0 }
  0x15   : > { %s306_s16 = scalar_select %p305_p12, %s2105_s25, 1 }
  0x16   : > { %s2657_s15 = smov (!%p311_p13, %s1661_s15), 7  ;;  %331 = sbr.rel (%p1663_p0) target bundleno = 29 (0x1d), region = 52 }
  0x17   : > { %s1899_s17 = smul.u32 96, %s306_s16  ;;  %s1662_s29 = sshll.u32 %s2657_s15, 3 }
  0x18   : > { %s2268_s12 = scalar_lea.vmem %s2630_s1, %s1662_s29 }
  0x19   : > { %s309_s20 = scalar_lea.vmem %s2629_s0, %s1899_s17 }
  0x1b   : > { %v2119_v0 = vmov -1e+30  }
  0x1c   : > { %332 = vst [vmem:[#allocation3] sm:$0x1] %v2119_v0 }
  0x1d PF: > { %s1664_s16 = sshll.u32 %s2101_s24, 5  ;;  %s2120_s15 = smov 4   ;;  %vm339_vm0 = vcmask 31744   ;;  %vm366_vm1 = vcmask 64544   ;;  %vm393_vm2 = vcmask 97344   ;;  %vm420_vm3 = vcmask 130144  }
  0x1e   : > { %s2276_s7 = scalar_lea.vmem %s309_s20, %s1664_s16  ;;  %s2121_s17 = smov 8   ;;  %vm447_vm4 = vcmask 162944   ;;  %vm474_vm5 = vcmask 195744   ;;  %vm501_vm6 = vcmask 228544   ;;  %vm528_vm7 = vcmask 261344  }
  0x1f   : > { %v2279_v1 = vld [vmem:[%s2276_s7 + $0x11] sm:$0xff]  ;;  %v1666_v2 = vld [vmem:[%s2276_s7 + $0x1] sm:$0xff]  ;;  %v2284_v3 = vld [vmem:[%s2276_s7 + $0x19] sm:$0xff]  ;;  %s2122_s18 = smov 12   ;;  %s2123_s19 = smov 16   ;;  %vm555_vm8 = vcmask 294144  }
  0x20   : > { %358 = vrot.lane.b32.xlu1 %v2279_v1, %s2120_s15  ;;  %354 = vrot.lane.b32.xlu0 %v1666_v2, %s2120_s15  ;;  %v2287_v4 = vld [vmem:[%s2276_s7 + $0x9] sm:$0xff]  ;;  %v2297_v7 = vld [vmem:[%s2276_s7 + $0x1a] sm:$0xff]  ;;  %s2124_s20 = smov 20   ;;  %s2125_s29 = smov 24   ;;  %vm582_vm9 = vcmask 326944   ;;  %vm609_vm10 = vcmask 359744  }
  0x21   : > { %v2292_v5 = vld [vmem:[%s2276_s7 + $0xa] sm:$0xff]  ;;  %v1671_v6 = vld [vmem:[%s2276_s7 + $0x2] sm:$0xff]  ;;  %v2300_v8 = vld [vmem:[%s2276_s7 + $0x12] sm:$0xff]  ;;  %s2126_s30 = smov 28   ;;  %s2127_s11 = smov 32   ;;  %vm636_vm11 = vcmask 392544  }
  0x22   : > { %v2303_v9 = vld [vmem:[%s2276_s7 + $0x10] sm:$0xff]  ;;  %v1701_v10 = vld [vmem:[%s2276_s7 + $0x8] sm:$0xff]  ;;  %v2307_v11 = vld [vmem:[%s2276_s7 + $0x18] sm:$0xff]  ;;  %s2128_s16 = smov 36   ;;  %vm663_vm12 = vcmask 425344   ;;  %vm690_vm13 = vcmask 458144  }
  0x23   : > { %342 = vst.msk [vmem:[#allocation2 + $0x10] sm:$0xff] %vm339_vm0, %v2303_v9  ;;  %341 = vst.msk [vmem:[#allocation2 + $0x8] sm:$0xff] %vm339_vm0, %v1701_v10  ;;  %v2317_v12 = vld [vmem:[%s2276_s7 + $0xb] sm:$0xff]  ;;  %v1676_v13 = vld [vmem:[%s2276_s7 + $0x3] sm:$0xff]  ;;  %vm717_vm14 = vcmask 490944   ;;  %vm744_vm15 = vcmask 523744  }
  0x24   : > { %360 = vrot.lane.b32.xlu1 %v2284_v3, %s2120_s15  ;;  %356 = vrot.lane.b32.xlu0 %v2287_v4, %s2120_s15  ;;  %343 = vst.msk [vmem:[#allocation2 + $0x18] sm:$0xff] %vm339_vm0, %v2307_v11  ;;  %v335_v14 = vld [vmem:[%s2276_s7] sm:$0xff]  ;;  %v2326_v16 = vld [vmem:[%s2276_s7 + $0x13] sm:$0xff]  ;;  %s2129_s15 = smov 40   ;;  %p1828_p1 = scmp.ne.s32.totalorder %s2101_s24, 1 }
  0x25   : > { %340 = vst.msk [vmem:[#allocation2] sm:$0xff] %vm339_vm0, %v335_v14  ;;  %v2323_v15 = vld [vmem:[%s2276_s7 + $0x1b] sm:$0xff]  ;;  %v1682_v17 = vld [vmem:[%s2276_s7 + $0xc] sm:$0xff]  ;;  %v1681_v18 = vld [vmem:[%s2276_s7 + $0x4] sm:$0xff]  ;;  %vm771_vm0 = vcmask 556544  }
  0x26   : > { %v2334_v19 = vld [vmem:[%s2276_s7 + $0x1c] sm:$0xff]  ;;  %v2337_v20 = vld [vmem:[%s2276_s7 + $0x14] sm:$0xff]  ;;  %v1686_v22 = vld [vmem:[%s2276_s7 + $0x5] sm:$0xff] }
  0x27   : > { %v1687_v21 = vld [vmem:[%s2276_s7 + $0xd] sm:$0xff]  ;;  %v2344_v23 = vld [vmem:[%s2276_s7 + $0x1d] sm:$0xff]  ;;  %v2347_v24 = vld [vmem:[%s2276_s7 + $0x15] sm:$0xff] }
  0x28   : > { %383 = vrot.lane.b32.xlu1 %v2292_v5, %s2121_s17  ;;  %381 = vrot.lane.b32.xlu0 %v1671_v6, %s2121_s17  ;;  %v1692_v25 = vld [vmem:[%s2276_s7 + $0xe] sm:$0xff]  ;;  %v1691_v26 = vld [vmem:[%s2276_s7 + $0x6] sm:$0xff] }
  0x29   : > { %v2354_v27 = vld [vmem:[%s2276_s7 + $0x1e] sm:$0xff]  ;;  %v2357_v28 = vld [vmem:[%s2276_s7 + $0x16] sm:$0xff]  ;;  %v1696_v30 = vld [vmem:[%s2276_s7 + $0x7] sm:$0xff] }
  0x2a   : > { %v1697_v29 = vld [vmem:[%s2276_s7 + $0xf] sm:$0xff]  ;;  %v2364_v31 = vld [vmem:[%s2276_s7 + $0x1f] sm:$0xff]  ;;  %v2367_v32 = vld [vmem:[%s2276_s7 + $0x17] sm:$0xff] }
  0x2b   : > { %v2373_v33 = vld [vmem:[%s2276_s7 + $0x20] sm:$0xff]  ;;  %v2425_v45 = vld [vmem:[%s2276_s7 + $0x28] sm:$0xff] }
  0x2c   : > { %387 = vrot.lane.b32.xlu1 %v2297_v7, %s2121_s17  ;;  %385 = vrot.lane.b32.xlu0 %v2300_v8, %s2121_s17  ;;  %v2380_v34 = vld [vmem:[%s2276_s7 + $0x21] sm:$0xff]  ;;  %s2130_s17 = smov 44   ;;  %v2432_v50 = vld [vmem:[%s2276_s7 + $0x29] sm:$0xff] }
  0x2d   : > { %v2387_v35 = vld [vmem:[%s2276_s7 + $0x22] sm:$0xff]  ;;  %v2439_v55 = vld [vmem:[%s2276_s7 + $0x2a] sm:$0xff] }
  0x2e   : > { %v2394_v36 = vld [vmem:[%s2276_s7 + $0x23] sm:$0xff]  ;;  %v2446_v60 = vld [vmem:[%s2276_s7 + $0x2b] sm:$0xff] }
  0x2f   : > { %v2400_v37 = vld [vmem:[%s2276_s7 + $0x24] sm:$0xff]  ;;  %v2467_v14 = vld [vmem:[%s2276_s7 + $0x2e] sm:$0xff] }
  0x30   : > { %410 = vrot.lane.b32.xlu1 %v2317_v12, %s2122_s18  ;;  %408 = vrot.lane.b32.xlu0 %v1676_v13, %s2122_s18  ;;  %v2406_v38 = vld [vmem:[%s2276_s7 + $0x25] sm:$0xff] }
  0x31   : > { %v2412_v39 = vld [vmem:[%s2276_s7 + $0x26] sm:$0xff] }
  0x32   : > { %v2418_v40 = vld [vmem:[%s2276_s7 + $0x27] sm:$0xff] }
  0x34   : > { %414 = vrot.lane.b32.xlu1 %v2323_v15, %s2122_s18  ;;  %412 = vrot.lane.b32.xlu0 %v2326_v16, %s2122_s18  ;;  %s2131_s18 = smov 48  }
  0x38   : > { %437 = vrot.lane.b32.xlu1 %v1682_v17, %s2123_s19  ;;  %435 = vrot.lane.b32.xlu0 %v1681_v18, %s2123_s19 }
  0x3c   : > { %441 = vrot.lane.b32.xlu1 %v2334_v19, %s2123_s19  ;;  %439 = vrot.lane.b32.xlu0 %v2337_v20, %s2123_s19  ;;  %s2132_s19 = smov 52  }
  0x40   : > { %464 = vrot.lane.b32.xlu1 %v1687_v21, %s2124_s20  ;;  %462 = vrot.lane.b32.xlu0 %v1686_v22, %s2124_s20 }
  0x44   : > { %468 = vrot.lane.b32.xlu1 %v2344_v23, %s2124_s20  ;;  %466 = vrot.lane.b32.xlu0 %v2347_v24, %s2124_s20  ;;  %s2133_s20 = smov 56  }
  0x48   : > { %491 = vrot.lane.b32.xlu1 %v1692_v25, %s2125_s29  ;;  %489 = vrot.lane.b32.xlu0 %v1691_v26, %s2125_s29 }
  0x4c   : > { %495 = vrot.lane.b32.xlu1 %v2354_v27, %s2125_s29  ;;  %493 = vrot.lane.b32.xlu0 %v2357_v28, %s2125_s29  ;;  %s2134_s29 = smov 60  }
  0x50   : > { %518 = vrot.lane.b32.xlu1 %v1697_v29, %s2126_s30  ;;  %516 = vrot.lane.b32.xlu0 %v1696_v30, %s2126_s30 }
  0x54   : > { %522 = vrot.lane.b32.xlu1 %v2364_v31, %s2126_s30  ;;  %520 = vrot.lane.b32.xlu0 %v2367_v32, %s2126_s30  ;;  %s2135_s30 = smov 64  }
  0x58   : > { %545 = vrot.lane.b32.xlu1 %v2303_v9, %s2127_s11  ;;  %543 = vrot.lane.b32.xlu0 %v1701_v10, %s2127_s11 }
  0x5c   : > { %549 = vrot.lane.b32.xlu1 %v2373_v33, %s2127_s11  ;;  %547 = vrot.lane.b32.xlu0 %v2307_v11, %s2127_s11  ;;  %s2136_s11 = smov 68  }
  0x60   : > { %572 = vrot.lane.b32.xlu1 %v2279_v1, %s2128_s16  ;;  %570 = vrot.lane.b32.xlu0 %v2287_v4, %s2128_s16 }
  0x64   : > { %576 = vrot.lane.b32.xlu1 %v2380_v34, %s2128_s16  ;;  %574 = vrot.lane.b32.xlu0 %v2284_v3, %s2128_s16  ;;  %s2137_s16 = smov 72  }
  0x68   : > { %599 = vrot.lane.b32.xlu1 %v2300_v8, %s2129_s15  ;;  %597 = vrot.lane.b32.xlu0 %v2292_v5, %s2129_s15 }
  0x6c   : > { %603 = vrot.lane.b32.xlu1 %v2387_v35, %s2129_s15  ;;  %601 = vrot.lane.b32.xlu0 %v2297_v7, %s2129_s15  ;;  %s2138_s15 = smov 76  }
  0x70   : > { %626 = vrot.lane.b32.xlu1 %v2326_v16, %s2130_s17  ;;  %624 = vrot.lane.b32.xlu0 %v2317_v12, %s2130_s17 }
  0x74   : > { %630 = vrot.lane.b32.xlu1 %v2394_v36, %s2130_s17  ;;  %628 = vrot.lane.b32.xlu0 %v2323_v15, %s2130_s17  ;;  %s2139_s17 = smov 80  }
  0x78   : > { %653 = vrot.lane.b32.xlu1 %v2337_v20, %s2131_s18  ;;  %651 = vrot.lane.b32.xlu0 %v1682_v17, %s2131_s18 }
  0x7c   : > { %657 = vrot.lane.b32.xlu1 %v2400_v37, %s2131_s18  ;;  %655 = vrot.lane.b32.xlu0 %v2334_v19, %s2131_s18  ;;  %s2140_s18 = smov 84  }
  0x80   : > { %680 = vrot.lane.b32.xlu1 %v2347_v24, %s2132_s19  ;;  %678 = vrot.lane.b32.xlu0 %v1687_v21, %s2132_s19  ;;  %v2474_v21 = vld [vmem:[%s2276_s7 + $0x2f] sm:$0xff] }
  0x84   : > { %684 = vrot.lane.b32.xlu1 %v2406_v38, %s2132_s19  ;;  %682 = vrot.lane.b32.xlu0 %v2344_v23, %s2132_s19  ;;  %s2141_s19 = smov 88  }
  0x88   : > { %707 = vrot.lane.b32.xlu1 %v2357_v28, %s2133_s20  ;;  %705 = vrot.lane.b32.xlu0 %v1692_v25, %s2133_s20 }
  0x8c   : > { %711 = vrot.lane.b32.xlu1 %v2412_v39, %s2133_s20  ;;  %709 = vrot.lane.b32.xlu0 %v2354_v27, %s2133_s20  ;;  %s2142_s20 = smov 92  }
  0x90   : > { %734 = vrot.lane.b32.xlu1 %v2367_v32, %s2134_s29  ;;  %732 = vrot.lane.b32.xlu0 %v1697_v29, %s2134_s29 }
  0x92   : > { %v359_v41 = vpop.permute.xlu1 %358  ;;  %v355_v42 = vpop.permute.xlu0 %354 }
  0x93   : > { %369 = vst.msk [vmem:[#allocation2 + $0x10] sm:$0xff] %vm366_vm1, %v359_v41  ;;  %367 = vst.msk [vmem:[#allocation2] sm:$0xff] %vm366_vm1, %v355_v42 }
  0x94   : > { %738 = vrot.lane.b32.xlu1 %v2418_v40, %s2134_s29  ;;  %736 = vrot.lane.b32.xlu0 %v2364_v31, %s2134_s29  ;;  %s2143_s29 = smov 96  }
  0x96   : > { %v361_v43 = vpop.permute.xlu1 %360  ;;  %v357_v44 = vpop.permute.xlu0 %356 }
  0x97   : > { %370 = vst.msk [vmem:[#allocation2 + $0x18] sm:$0xff] %vm366_vm1, %v361_v43  ;;  %368 = vst.msk [vmem:[#allocation2 + $0x8] sm:$0xff] %vm366_vm1, %v357_v44  ;;  %vm798_vm1 = vcmask 589344  }
  0x98   : > { %761 = vrot.lane.b32.xlu1 %v2307_v11, %s2135_s30  ;;  %759 = vrot.lane.b32.xlu0 %v2303_v9, %s2135_s30 }
  0x9a   : > { %v384_v46 = vpop.permute.xlu1 %383  ;;  %v382_v47 = vpop.permute.xlu0 %381 }
  0x9b   : > { %395 = vst.msk [vmem:[#allocation2 + $0x8] sm:$0xff] %vm393_vm2, %v384_v46  ;;  %394 = vst.msk [vmem:[#allocation2] sm:$0xff] %vm393_vm2, %v382_v47 }
  0x9c   : > { %765 = vrot.lane.b32.xlu1 %v2425_v45, %s2135_s30  ;;  %763 = vrot.lane.b32.xlu0 %v2373_v33, %s2135_s30  ;;  %s2144_s30 = smov 100  }
  0x9e   : > { %v388_v48 = vpop.permute.xlu1 %387  ;;  %v386_v49 = vpop.permute.xlu0 %385 }
  0x9f   : > { %397 = vst.msk [vmem:[#allocation2 + $0x18] sm:$0xff] %vm393_vm2, %v388_v48  ;;  %396 = vst.msk [vmem:[#allocation2 + $0x10] sm:$0xff] %vm393_vm2, %v386_v49  ;;  %vm825_vm2 = vcmask 622144  }
  0xa0   : > { %788 = vrot.lane.b32.xlu1 %v2284_v3, %s2136_s11  ;;  %786 = vrot.lane.b32.xlu0 %v2279_v1, %s2136_s11  ;;  %v2453_v1 = vld [vmem:[%s2276_s7 + $0x2c] sm:$0xff] }
  0xa2   : > { %v411_v51 = vpop.permute.xlu1 %410  ;;  %v409_v52 = vpop.permute.xlu0 %408 }
  0xa3   : > { %422 = vst.msk [vmem:[#allocation2 + $0x8] sm:$0xff] %vm420_vm3, %v411_v51  ;;  %421 = vst.msk [vmem:[#allocation2] sm:$0xff] %vm420_vm3, %v409_v52  ;;  %v2007_v51 = vld [vmem:[%s2631_s2 + $0x28] sm:$0xff]   ;;  %v1804_v52 = vld [vmem:[%s2276_s7 + $0x34] sm:$0xff] }
  0xa4   : > { %792 = vrot.lane.b32.xlu1 %v2432_v50, %s2136_s11  ;;  %790 = vrot.lane.b32.xlu0 %v2380_v34, %s2136_s11  ;;  %s2145_s11 = smov 104  }
  0xa6   : > { %v415_v53 = vpop.permute.xlu1 %414  ;;  %v413_v54 = vpop.permute.xlu0 %412 }
  0xa7   : > { %424 = vst.msk [vmem:[#allocation2 + $0x18] sm:$0xff] %vm420_vm3, %v415_v53  ;;  %423 = vst.msk [vmem:[#allocation2 + $0x10] sm:$0xff] %vm420_vm3, %v413_v54  ;;  %vm852_vm3 = vcmask 654944  }
  0xa8   : > { %815 = vrot.lane.b32.xlu1 %v2297_v7, %s2137_s16  ;;  %813 = vrot.lane.b32.xlu0 %v2300_v8, %s2137_s16  ;;  %v2460_v8 = vld [vmem:[%s2276_s7 + $0x2d] sm:$0xff] }
  0xaa   : > { %v438_v56 = vpop.permute.xlu1 %437  ;;  %v436_v57 = vpop.permute.xlu0 %435 }
  0xab   : > { %449 = vst.msk [vmem:[#allocation2 + $0x8] sm:$0xff] %vm447_vm4, %v438_v56  ;;  %448 = vst.msk [vmem:[#allocation2] sm:$0xff] %vm447_vm4, %v436_v57  ;;  %v2009_v56 = vld [vmem:[%s2631_s2 + $0x18] sm:$0xff]  }
  0xac   : > { %819 = vrot.lane.b32.xlu1 %v2439_v55, %s2137_s16  ;;  %817 = vrot.lane.b32.xlu0 %v2387_v35, %s2137_s16  ;;  %v1809_v57 = vld [vmem:[%s2276_s7 + $0x35] sm:$0xff] }
  0xae   : > { %v442_v58 = vpop.permute.xlu1 %441  ;;  %v440_v59 = vpop.permute.xlu0 %439 }
  0xaf   : > { %451 = vst.msk [vmem:[#allocation2 + $0x18] sm:$0xff] %vm447_vm4, %v442_v58  ;;  %450 = vst.msk [vmem:[#allocation2 + $0x10] sm:$0xff] %vm447_vm4, %v440_v59  ;;  %vm879_vm4 = vcmask 687744  }
  0xb0   : > { %842 = vrot.lane.b32.xlu1 %v2323_v15, %s2138_s15  ;;  %840 = vrot.lane.b32.xlu0 %v2326_v16, %s2138_s15 }
  0xb2   : > { %v465_v61 = vpop.permute.xlu1 %464  ;;  %v463_v62 = vpop.permute.xlu0 %462 }
  0xb3   : > { %476 = vst.msk [vmem:[#allocation2 + $0x8] sm:$0xff] %vm474_vm5, %v465_v61  ;;  %475 = vst.msk [vmem:[#allocation2] sm:$0xff] %vm474_vm5, %v463_v62  ;;  %v2011_v61 = vld [vmem:[%s2631_s2 + $0x8] sm:$0xff]   ;;  %v2012_v62 = vld [vmem:[%s2631_s2] sm:$0xff]  }
  0xb4   : > { %846 = vrot.lane.b32.xlu1 %v2446_v60, %s2138_s15  ;;  %844 = vrot.lane.b32.xlu0 %v2394_v36, %s2138_s15  ;;  %s2149_s15 = smov 120  }
  0xb6   : > { %v469_v63 = vpop.permute.xlu1 %468  ;;  %v467_v0 = vpop.permute.xlu0 %466 }
  0xb7   : > { %478 = vst.msk [vmem:[#allocation2 + $0x18] sm:$0xff] %vm474_vm5, %v469_v63  ;;  %477 = vst.msk [vmem:[#allocation2 + $0x10] sm:$0xff] %vm474_vm5, %v467_v0  ;;  %v1814_v63 = vld [vmem:[%s2276_s7 + $0x36] sm:$0xff]  ;;  %vm906_vm5 = vcmask 720544  }
  0xb8   : > { %869 = vrot.lane.b32.xlu1 %v2334_v19, %s2139_s17  ;;  %867 = vrot.lane.b32.xlu0 %v2337_v20, %s2139_s17 }
  0xba   : > { %v492_v2 = vpop.permute.xlu1 %491  ;;  %v490_v4 = vpop.permute.xlu0 %489 }
  0xbb   : > { %503 = vst.msk [vmem:[#allocation2 + $0x8] sm:$0xff] %vm501_vm6, %v492_v2  ;;  %502 = vst.msk [vmem:[#allocation2] sm:$0xff] %vm501_vm6, %v490_v4 }
  0xbc   : > { %873 = vrot.lane.b32.xlu1 %v2453_v1, %s2139_s17  ;;  %871 = vrot.lane.b32.xlu0 %v2400_v37, %s2139_s17  ;;  %s2146_s17 = smov 108  }
  0xbe   : > { %v496_v5 = vpop.permute.xlu1 %495  ;;  %v494_v6 = vpop.permute.xlu0 %493 }
  0xbf   : > { %505 = vst.msk [vmem:[#allocation2 + $0x18] sm:$0xff] %vm501_vm6, %v496_v5  ;;  %504 = vst.msk [vmem:[#allocation2 + $0x10] sm:$0xff] %vm501_vm6, %v494_v6  ;;  %vm933_vm6 = vcmask 753344  }
  0xc0   : > { %896 = vrot.lane.b32.xlu1 %v2344_v23, %s2140_s18  ;;  %894 = vrot.lane.b32.xlu0 %v2347_v24, %s2140_s18 }
  0xc2   : > { %v519_v9 = vpop.permute.xlu1 %518  ;;  %v517_v10 = vpop.permute.xlu0 %516 }
  0xc3   : > { %530 = vst.msk [vmem:[#allocation2 + $0x8] sm:$0xff] %vm528_vm7, %v519_v9  ;;  %529 = vst.msk [vmem:[#allocation2] sm:$0xff] %vm528_vm7, %v517_v10 }
  0xc4   : > { %900 = vrot.lane.b32.xlu1 %v2460_v8, %s2140_s18  ;;  %898 = vrot.lane.b32.xlu0 %v2406_v38, %s2140_s18  ;;  %s2148_s18 = smov 116  }
  0xc6   : > { %v523_v12 = vpop.permute.xlu1 %522  ;;  %v521_v13 = vpop.permute.xlu0 %520 }
  0xc7   : > { %532 = vst.msk [vmem:[#allocation2 + $0x18] sm:$0xff] %vm528_vm7, %v523_v12  ;;  %531 = vst.msk [vmem:[#allocation2 + $0x10] sm:$0xff] %vm528_vm7, %v521_v13  ;;  %vm960_vm7 = vcmask 786144  }
  0xc8   : > { %923 = vrot.lane.b32.xlu1 %v2354_v27, %s2141_s19  ;;  %921 = vrot.lane.b32.xlu0 %v2357_v28, %s2141_s19  ;;  %v1784_v28 = vld [vmem:[%s2276_s7 + $0x30] sm:$0xff] }
  0xca   : > { %v546_v16 = vpop.permute.xlu1 %545  ;;  %v544_v17 = vpop.permute.xlu0 %543 }
  0xcb   : > { %557 = vst.msk [vmem:[#allocation2 + $0x8] sm:$0xff] %vm555_vm8, %v546_v16  ;;  %556 = vst.msk [vmem:[#allocation2] sm:$0xff] %vm555_vm8, %v544_v17 }
  0xcc   : > { %927 = vrot.lane.b32.xlu1 %v2467_v14, %s2141_s19  ;;  %925 = vrot.lane.b32.xlu0 %v2412_v39, %s2141_s19 }
  0xce   : > { %v550_v18 = vpop.permute.xlu1 %549  ;;  %v548_v20 = vpop.permute.xlu0 %547 }
  0xcf   : > { %559 = vst.msk [vmem:[#allocation2 + $0x18] sm:$0xff] %vm555_vm8, %v550_v18  ;;  %558 = vst.msk [vmem:[#allocation2 + $0x10] sm:$0xff] %vm555_vm8, %v548_v20  ;;  %vm987_vm8 = vcmask 818944  }
  0xd0   : > { %950 = vrot.lane.b32.xlu1 %v2364_v31, %s2142_s20  ;;  %948 = vrot.lane.b32.xlu0 %v2367_v32, %s2142_s20 }
  0xd2   : > { %v573_v22 = vpop.permute.xlu1 %572  ;;  %v571_v24 = vpop.permute.xlu0 %570 }
  0xd3   : > { %584 = vst.msk [vmem:[#allocation2 + $0x8] sm:$0xff] %vm582_vm9, %v573_v22  ;;  %583 = vst.msk [vmem:[#allocation2] sm:$0xff] %vm582_vm9, %v571_v24 }
  0xd4   : > { %954 = vrot.lane.b32.xlu1 %v2474_v21, %s2142_s20  ;;  %952 = vrot.lane.b32.xlu0 %v2418_v40, %s2142_s20 }
  0xd6   : > { %v577_v25 = vpop.permute.xlu1 %576  ;;  %v575_v26 = vpop.permute.xlu0 %574 }
  0xd7   : > { %586 = vst.msk [vmem:[#allocation2 + $0x18] sm:$0xff] %vm582_vm9, %v577_v25  ;;  %585 = vst.msk [vmem:[#allocation2 + $0x10] sm:$0xff] %vm582_vm9, %v575_v26  ;;  %vm1014_vm9 = vcmask 851744  }
  0xd8   : > { %977 = vrot.lane.b32.xlu1 %v2373_v33, %s2143_s29  ;;  %975 = vrot.lane.b32.xlu0 %v2307_v11, %s2143_s29  ;;  %v1789_v11 = vld [vmem:[%s2276_s7 + $0x31] sm:$0xff] }
  0xda   : > { %v600_v29 = vpop.permute.xlu1 %599  ;;  %v598_v30 = vpop.permute.xlu0 %597 }
  0xdb   : > { %611 = vst.msk [vmem:[#allocation2 + $0x8] sm:$0xff] %vm609_vm10, %v600_v29  ;;  %610 = vst.msk [vmem:[#allocation2] sm:$0xff] %vm609_vm10, %v598_v30 }
  0xdc   : > { %981 = vrot.lane.b32.xlu1 %v1784_v28, %s2143_s29  ;;  %979 = vrot.lane.b32.xlu0 %v2425_v45, %s2143_s29 }
  0xde   : > { %v604_v32 = vpop.permute.xlu1 %603  ;;  %v602_v41 = vpop.permute.xlu0 %601 }
  0xdf   : > { %613 = vst.msk [vmem:[#allocation2 + $0x18] sm:$0xff] %vm609_vm10, %v604_v32  ;;  %612 = vst.msk [vmem:[#allocation2 + $0x10] sm:$0xff] %vm609_vm10, %v602_v41  ;;  %vm1041_vm10 = vcmask 884544  }
  0xe0   : > { %1004 = vrot.lane.b32.xlu1 %v2380_v34, %s2144_s30  ;;  %1002 = vrot.lane.b32.xlu0 %v2284_v3, %s2144_s30  ;;  %v1794_v3 = vld [vmem:[%s2276_s7 + $0x32] sm:$0xff] }
  0xe2   : > { %v627_v33 = vpop.permute.xlu1 %626  ;;  %v625_v42 = vpop.permute.xlu0 %624 }
  0xe3   : > { %638 = vst.msk [vmem:[#allocation2 + $0x8] sm:$0xff] %vm636_vm11, %v627_v33  ;;  %637 = vst.msk [vmem:[#allocation2] sm:$0xff] %vm636_vm11, %v625_v42 }
  0xe4   : > { %1008 = vrot.lane.b32.xlu1 %v1789_v11, %s2144_s30  ;;  %1006 = vrot.lane.b32.xlu0 %v2432_v50, %s2144_s30  ;;  %v2006_v50 = vld [vmem:[%s2631_s2 + $0x30] sm:$0xff]   ;;  %s2147_s30 = smov 112  }
  0xe6   : > { %v631_v43 = vpop.permute.xlu1 %630  ;;  %v629_v44 = vpop.permute.xlu0 %628 }
  0xe7   : > { %640 = vst.msk [vmem:[#allocation2 + $0x18] sm:$0xff] %vm636_vm11, %v631_v43  ;;  %639 = vst.msk [vmem:[#allocation2 + $0x10] sm:$0xff] %vm636_vm11, %v629_v44  ;;  %vm1068_vm11 = vcmask 917344  }
  0xe8   : > { %1031 = vrot.lane.b32.xlu1 %v2387_v35, %s2145_s11  ;;  %1029 = vrot.lane.b32.xlu0 %v2297_v7, %s2145_s11  ;;  %v2005_v35 = vld [vmem:[%s2631_s2 + $0x38] sm:$0xff]  }
  0xe9   : > { %v1799_v7 = vld [vmem:[%s2276_s7 + $0x33] sm:$0xff]  ;;  %1859 = vmatprep.subr.bf16.mxu0 %v2005_v35 }
  0xea   : > { %v654_v34 = vpop.permute.xlu1 %653  ;;  %v652_v45 = vpop.permute.xlu0 %651  ;;  %1860 = vmatpush3.bf16.msra.mxu0 %v2005_v35 }
  0xeb   : > { %665 = vst.msk [vmem:[#allocation2 + $0x8] sm:$0xff] %vm663_vm12, %v654_v34  ;;  %664 = vst.msk [vmem:[#allocation2] sm:$0xff] %vm663_vm12, %v652_v45  ;;  %1861 = vmatprep.subr.bf16.mxu0 %v2006_v50 }
  0xec   : > { %1035 = vrot.lane.b32.xlu1 %v1794_v3, %s2145_s11  ;;  %1033 = vrot.lane.b32.xlu0 %v2439_v55, %s2145_s11  ;;  %v2008_v55 = vld [vmem:[%s2631_s2 + $0x20] sm:$0xff]  }
  0xee   : > { %v658_v46 = vpop.permute.xlu1 %657  ;;  %v656_v47 = vpop.permute.xlu0 %655  ;;  %1862 = vmatpush3.bf16.msra.mxu0 %v2006_v50 }
  0xef   : > { %667 = vst.msk [vmem:[#allocation2 + $0x18] sm:$0xff] %vm663_vm12, %v658_v46  ;;  %666 = vst.msk [vmem:[#allocation2 + $0x10] sm:$0xff] %vm663_vm12, %v656_v47  ;;  %1863 = vmatprep.subr.bf16.mxu0 %v2007_v51  ;;  %vm1095_vm12 = vcmask 950144  }
  0xf0   : > { %1058 = vrot.lane.b32.xlu1 %v2394_v36, %s2146_s17  ;;  %1056 = vrot.lane.b32.xlu0 %v2323_v15, %s2146_s17 }
  0xf2   : > { %v681_v48 = vpop.permute.xlu1 %680  ;;  %v679_v49 = vpop.permute.xlu0 %678  ;;  %1864 = vmatpush3.bf16.msra.mxu0 %v2007_v51 }
  0xf3   : > { %692 = vst.msk [vmem:[#allocation2 + $0x8] sm:$0xff] %vm690_vm13, %v681_v48  ;;  %691 = vst.msk [vmem:[#allocation2] sm:$0xff] %vm690_vm13, %v679_v49  ;;  %1865 = vmatprep.subr.bf16.mxu0 %v2008_v55 }
  0xf4   : > { %1062 = vrot.lane.b32.xlu1 %v1799_v7, %s2146_s17  ;;  %1060 = vrot.lane.b32.xlu0 %v2446_v60, %s2146_s17  ;;  %v2010_v60 = vld [vmem:[%s2631_s2 + $0x10] sm:$0xff]   ;;  %s2150_s17 = smov 124  }
  0xf6   : > { %v685_v15 = vpop.permute.xlu1 %684  ;;  %v683_v36 = vpop.permute.xlu0 %682  ;;  %1866 = vmatpush3.bf16.msra.mxu0 %v2008_v55 }
  0xf7   : > { %694 = vst.msk [vmem:[#allocation2 + $0x18] sm:$0xff] %vm690_vm13, %v685_v15  ;;  %693 = vst.msk [vmem:[#allocation2 + $0x10] sm:$0xff] %vm690_vm13, %v683_v36  ;;  %1867 = vmatprep.subr.bf16.mxu0 %v2009_v56  ;;  %vm1122_vm13 = vcmask 982944  }
  0xf8   : > { %1085 = vrot.lane.b32.xlu1 %v2400_v37, %s2147_s30  ;;  %1083 = vrot.lane.b32.xlu0 %v2334_v19, %s2147_s30 }
  0xfa   : > { %v708_v53 = vpop.permute.xlu1 %707  ;;  %v706_v54 = vpop.permute.xlu0 %705  ;;  %1868 = vmatpush3.bf16.msra.mxu0 %v2009_v56 }
  0xfb   : > { %719 = vst.msk [vmem:[#allocation2 + $0x8] sm:$0xff] %vm717_vm14, %v708_v53  ;;  %718 = vst.msk [vmem:[#allocation2] sm:$0xff] %vm717_vm14, %v706_v54  ;;  %1869 = vmatprep.subr.bf16.mxu0 %v2010_v60 }
  0xfc   : > { %1089 = vrot.lane.b32.xlu1 %v1804_v52, %s2147_s30  ;;  %1087 = vrot.lane.b32.xlu0 %v2453_v1, %s2147_s30 }
  0xfe   : > { %v712_v19 = vpop.permute.xlu1 %711  ;;  %v710_v37 = vpop.permute.xlu0 %709  ;;  %1870 = vmatpush3.bf16.msra.mxu0 %v2010_v60 }
  0xff   : > { %721 = vst.msk [vmem:[#allocation2 + $0x18] sm:$0xff] %vm717_vm14, %v712_v19  ;;  %720 = vst.msk [vmem:[#allocation2 + $0x10] sm:$0xff] %vm717_vm14, %v710_v37  ;;  %1871 = vmatprep.subr.bf16.mxu0 %v2011_v61  ;;  %vm1149_vm14 = vcmask 1015744  }
 0x100   : > { %1112 = vrot.lane.b32.xlu1 %v2406_v38, %s2148_s18  ;;  %1110 = vrot.lane.b32.xlu0 %v2344_v23, %s2148_s18 }
 0x102   : > { %v735_v58 = vpop.permute.xlu1 %734  ;;  %v733_v59 = vpop.permute.xlu0 %732  ;;  %1872 = vmatpush3.bf16.msra.mxu0 %v2011_v61 }
 0x103   : > { %746 = vst.msk [vmem:[#allocation2 + $0x8] sm:$0xff] %vm744_vm15, %v735_v58  ;;  %745 = vst.msk [vmem:[#allocation2] sm:$0xff] %vm744_vm15, %v733_v59  ;;  %1873 = vmatprep.subr.bf16.mxu0 %v2012_v62 }
 0x104   : > { %1116 = vrot.lane.b32.xlu1 %v1809_v57, %s2148_s18  ;;  %1114 = vrot.lane.b32.xlu0 %v2460_v8, %s2148_s18 }
 0x106   : > { %v739_v23 = vpop.permute.xlu1 %738  ;;  %v737_v38 = vpop.permute.xlu0 %736  ;;  %1874 = vmatpush3.bf16.msra.mxu0 %v2012_v62 }
 0x107   : > { %748 = vst.msk [vmem:[#allocation2 + $0x18] sm:$0xff] %vm744_vm15, %v739_v23  ;;  %747 = vst.msk [vmem:[#allocation2 + $0x10] sm:$0xff] %vm744_vm15, %v737_v38  ;;  %vm1176_vm15 = vcmask 1048544  }
 0x108   : > { %1139 = vrot.lane.b32.xlu1 %v2412_v39, %s2149_s15  ;;  %1137 = vrot.lane.b32.xlu0 %v2354_v27, %s2149_s15  ;;  %v1819_v27 = vld [vmem:[%s2276_s7 + $0x37] sm:$0xff] }
 0x10a   : > { %v762_v0 = vpop.permute.xlu1 %761  ;;  %v760_v1 = vpop.permute.xlu0 %759 }
 0x10b   : > { %773 = vst.msk [vmem:[#allocation2 + $0x8] sm:$0xff] %vm771_vm0, %v762_v0  ;;  %772 = vst.msk [vmem:[#allocation2] sm:$0xff] %vm771_vm0, %v760_v1 }
 0x10c   : > { %1143 = vrot.lane.b32.xlu1 %v1814_v63, %s2149_s15  ;;  %1141 = vrot.lane.b32.xlu0 %v2467_v14, %s2149_s15 }
 0x10e   : > { %v766_v2 = vpop.permute.xlu1 %765  ;;  %v764_v4 = vpop.permute.xlu0 %763 }
 0x10f   : > { %775 = vst.msk [vmem:[#allocation2 + $0x18] sm:$0xff] %vm771_vm0, %v766_v2  ;;  %774 = vst.msk [vmem:[#allocation2 + $0x10] sm:$0xff] %vm771_vm0, %v764_v4 }
 0x110   : > { %1166 = vrot.lane.b32.xlu1 %v2418_v40, %s2150_s17  ;;  %1164 = vrot.lane.b32.xlu0 %v2364_v31, %s2150_s17 }
 0x112   : > { %v789_v39 = vpop.permute.xlu1 %788  ;;  %v787_v5 = vpop.permute.xlu0 %786 }
 0x113   : > { %800 = vst.msk [vmem:[#allocation2 + $0x8] sm:$0xff] %vm798_vm1, %v789_v39  ;;  %799 = vst.msk [vmem:[#allocation2] sm:$0xff] %vm798_vm1, %v787_v5 }
 0x114   : > { %1170 = vrot.lane.b32.xlu1 %v1819_v27, %s2150_s17  ;;  %1168 = vrot.lane.b32.xlu0 %v2474_v21, %s2150_s17 }
 0x116   : > { %v793_v6 = vpop.permute.xlu1 %792  ;;  %v791_v8 = vpop.permute.xlu0 %790 }
 0x117   : > { %802 = vst.msk [vmem:[#allocation2 + $0x18] sm:$0xff] %vm798_vm1, %v793_v6  ;;  %801 = vst.msk [vmem:[#allocation2 + $0x10] sm:$0xff] %vm798_vm1, %v791_v8 }
 0x11a   : > { %v816_v9 = vpop.permute.xlu1 %815  ;;  %v814_v10 = vpop.permute.xlu0 %813 }
 0x11b   : > { %827 = vst.msk [vmem:[#allocation2 + $0x8] sm:$0xff] %vm825_vm2, %v816_v9  ;;  %826 = vst.msk [vmem:[#allocation2] sm:$0xff] %vm825_vm2, %v814_v10  ;;  %v1206_v9 = vld [vmem:[%s2268_s12 + $0x18] sm:$0xff]  ;;  %v1205_v10 = vld [vmem:[%s2268_s12 + $0x10] sm:$0xff] }
 0x11e   : > { %v820_v40 = vpop.permute.xlu1 %819  ;;  %v818_v31 = vpop.permute.xlu0 %817 }
 0x11f   : > { %829 = vst.msk [vmem:[#allocation2 + $0x18] sm:$0xff] %vm825_vm2, %v820_v40  ;;  %828 = vst.msk [vmem:[#allocation2 + $0x10] sm:$0xff] %vm825_vm2, %v818_v31  ;;  %v1203_v40 = vld [vmem:[%s2268_s12] sm:$0xff] }
 0x122   : > { %v843_v12 = vpop.permute.xlu1 %842  ;;  %v841_v13 = vpop.permute.xlu0 %840 }
 0x123   : > { %854 = vst.msk [vmem:[#allocation2 + $0x8] sm:$0xff] %vm852_vm3, %v843_v12  ;;  %853 = vst.msk [vmem:[#allocation2] sm:$0xff] %vm852_vm3, %v841_v13  ;;  %v1204_v12 = vld [vmem:[%s2268_s12 + $0x8] sm:$0xff] }
 0x126   : > { %v847_v14 = vpop.permute.xlu1 %846  ;;  %v845_v16 = vpop.permute.xlu0 %844 }
 0x127   : > { %856 = vst.msk [vmem:[#allocation2 + $0x18] sm:$0xff] %vm852_vm3, %v847_v14  ;;  %855 = vst.msk [vmem:[#allocation2 + $0x10] sm:$0xff] %vm852_vm3, %v845_v16 }
 0x12a   : > { %v870_v17 = vpop.permute.xlu1 %869  ;;  %v868_v18 = vpop.permute.xlu0 %867 }
 0x12b   : > { %881 = vst.msk [vmem:[#allocation2 + $0x8] sm:$0xff] %vm879_vm4, %v870_v17  ;;  %880 = vst.msk [vmem:[#allocation2] sm:$0xff] %vm879_vm4, %v868_v18 }
 0x12e   : > { %v874_v20 = vpop.permute.xlu1 %873  ;;  %v872_v21 = vpop.permute.xlu0 %871 }
 0x12f   : > { %883 = vst.msk [vmem:[#allocation2 + $0x18] sm:$0xff] %vm879_vm4, %v874_v20  ;;  %882 = vst.msk [vmem:[#allocation2 + $0x10] sm:$0xff] %vm879_vm4, %v872_v21 }
 0x132   : > { %v897_v22 = vpop.permute.xlu1 %896  ;;  %v895_v24 = vpop.permute.xlu0 %894 }
 0x133   : > { %908 = vst.msk [vmem:[#allocation2 + $0x8] sm:$0xff] %vm906_vm5, %v897_v22  ;;  %907 = vst.msk [vmem:[#allocation2] sm:$0xff] %vm906_vm5, %v895_v24 }
 0x136   : > { %v901_v25 = vpop.permute.xlu1 %900  ;;  %v899_v26 = vpop.permute.xlu0 %898 }
 0x137   : > { %910 = vst.msk [vmem:[#allocation2 + $0x18] sm:$0xff] %vm906_vm5, %v901_v25  ;;  %909 = vst.msk [vmem:[#allocation2 + $0x10] sm:$0xff] %vm906_vm5, %v899_v26 }
 0x13a   : > { %v924_v28 = vpop.permute.xlu1 %923  ;;  %v922_v29 = vpop.permute.xlu0 %921 }
 0x13b   : > { %935 = vst.msk [vmem:[#allocation2 + $0x8] sm:$0xff] %vm933_vm6, %v924_v28  ;;  %934 = vst.msk [vmem:[#allocation2] sm:$0xff] %vm933_vm6, %v922_v29 }
 0x13e   : > { %v928_v30 = vpop.permute.xlu1 %927  ;;  %v926_v32 = vpop.permute.xlu0 %925 }
 0x13f   : > { %937 = vst.msk [vmem:[#allocation2 + $0x18] sm:$0xff] %vm933_vm6, %v928_v30  ;;  %936 = vst.msk [vmem:[#allocation2 + $0x10] sm:$0xff] %vm933_vm6, %v926_v32  ;;  %v1304_v30 = vld [vmem:[#allocation3] sm:$0x1] }
 0x142   : > { %v951_v41 = vpop.permute.xlu1 %950  ;;  %v949_v11 = vpop.permute.xlu0 %948 }
 0x143   : > { %962 = vst.msk [vmem:[#allocation2 + $0x8] sm:$0xff] %vm960_vm7, %v951_v41  ;;  %961 = vst.msk [vmem:[#allocation2] sm:$0xff] %vm960_vm7, %v949_v11 }
 0x146   : > { %v955_v33 = vpop.permute.xlu1 %954  ;;  %v953_v42 = vpop.permute.xlu0 %952 }
 0x147   : > { %964 = vst.msk [vmem:[#allocation2 + $0x18] sm:$0xff] %vm960_vm7, %v955_v33  ;;  %963 = vst.msk [vmem:[#allocation2 + $0x10] sm:$0xff] %vm960_vm7, %v953_v42 }
 0x14a   : > { %v978_v43 = vpop.permute.xlu1 %977  ;;  %v976_v44 = vpop.permute.xlu0 %975 }
 0x14b   : > { %989 = vst.msk [vmem:[#allocation2 + $0x8] sm:$0xff] %vm987_vm8, %v978_v43  ;;  %988 = vst.msk [vmem:[#allocation2] sm:$0xff] %vm987_vm8, %v976_v44 }
 0x14e   : > { %v982_v3 = vpop.permute.xlu1 %981  ;;  %v980_v34 = vpop.permute.xlu0 %979 }
 0x14f   : > { %991 = vst.msk [vmem:[#allocation2 + $0x18] sm:$0xff] %vm987_vm8, %v982_v3  ;;  %990 = vst.msk [vmem:[#allocation2 + $0x10] sm:$0xff] %vm987_vm8, %v980_v34 }
 0x152   : > { %v1005_v45 = vpop.permute.xlu1 %1004  ;;  %v1003_v46 = vpop.permute.xlu0 %1002 }
 0x153   : > { %1016 = vst.msk [vmem:[#allocation2 + $0x8] sm:$0xff] %vm1014_vm9, %v1005_v45  ;;  %1015 = vst.msk [vmem:[#allocation2] sm:$0xff] %vm1014_vm9, %v1003_v46 }
 0x156   : > { %v1009_v47 = vpop.permute.xlu1 %1008  ;;  %v1007_v35 = vpop.permute.xlu0 %1006 }
 0x157   : > { %1018 = vst.msk [vmem:[#allocation2 + $0x18] sm:$0xff] %vm1014_vm9, %v1009_v47  ;;  %1017 = vst.msk [vmem:[#allocation2 + $0x10] sm:$0xff] %vm1014_vm9, %v1007_v35 }
 0x15a   : > { %v1032_v7 = vpop.permute.xlu1 %1031  ;;  %v1030_v48 = vpop.permute.xlu0 %1029 }
 0x15b   : > { %1043 = vst.msk [vmem:[#allocation2 + $0x8] sm:$0xff] %vm1041_vm10, %v1032_v7  ;;  %1042 = vst.msk [vmem:[#allocation2] sm:$0xff] %vm1041_vm10, %v1030_v48 }
 0x15e   : > { %v1036_v49 = vpop.permute.xlu1 %1035  ;;  %v1034_v50 = vpop.permute.xlu0 %1033 }
 0x15f   : > { %1045 = vst.msk [vmem:[#allocation2 + $0x18] sm:$0xff] %vm1041_vm10, %v1036_v49  ;;  %1044 = vst.msk [vmem:[#allocation2 + $0x10] sm:$0xff] %vm1041_vm10, %v1034_v50 }
 0x162   : > { %v1059_v15 = vpop.permute.xlu1 %1058  ;;  %v1057_v36 = vpop.permute.xlu0 %1056 }
 0x163   : > { %1070 = vst.msk [vmem:[#allocation2 + $0x8] sm:$0xff] %vm1068_vm11, %v1059_v15  ;;  %1069 = vst.msk [vmem:[#allocation2] sm:$0xff] %vm1068_vm11, %v1057_v36 }
 0x166   : > { %v1063_v51 = vpop.permute.xlu1 %1062  ;;  %v1061_v52 = vpop.permute.xlu0 %1060 }
 0x167   : > { %1072 = vst.msk [vmem:[#allocation2 + $0x18] sm:$0xff] %vm1068_vm11, %v1063_v51  ;;  %1071 = vst.msk [vmem:[#allocation2 + $0x10] sm:$0xff] %vm1068_vm11, %v1061_v52 }
 0x16a   : > { %v1086_v53 = vpop.permute.xlu1 %1085  ;;  %v1084_v54 = vpop.permute.xlu0 %1083 }
 0x16b   : > { %1097 = vst.msk [vmem:[#allocation2 + $0x8] sm:$0xff] %vm1095_vm12, %v1086_v53  ;;  %1096 = vst.msk [vmem:[#allocation2] sm:$0xff] %vm1095_vm12, %v1084_v54 }
 0x16e   : > { %v1090_v55 = vpop.permute.xlu1 %1089  ;;  %v1088_v19 = vpop.permute.xlu0 %1087 }
 0x16f   : > { %1099 = vst.msk [vmem:[#allocation2 + $0x18] sm:$0xff] %vm1095_vm12, %v1090_v55  ;;  %1098 = vst.msk [vmem:[#allocation2 + $0x10] sm:$0xff] %vm1095_vm12, %v1088_v19 }
 0x172   : > { %v1113_v37 = vpop.permute.xlu1 %1112  ;;  %v1111_v56 = vpop.permute.xlu0 %1110 }
 0x173   : > { %1124 = vst.msk [vmem:[#allocation2 + $0x8] sm:$0xff] %vm1122_vm13, %v1113_v37  ;;  %1123 = vst.msk [vmem:[#allocation2] sm:$0xff] %vm1122_vm13, %v1111_v56 }
 0x176   : > { %v1117_v57 = vpop.permute.xlu1 %1116  ;;  %v1115_v58 = vpop.permute.xlu0 %1114 }
 0x177   : > { %1126 = vst.msk [vmem:[#allocation2 + $0x18] sm:$0xff] %vm1122_vm13, %v1117_v57  ;;  %1125 = vst.msk [vmem:[#allocation2 + $0x10] sm:$0xff] %vm1122_vm13, %v1115_v58 }
 0x17a   : > { %v1140_v59 = vpop.permute.xlu1 %1139  ;;  %v1138_v60 = vpop.permute.xlu0 %1137 }
 0x17b   : > { %1151 = vst.msk [vmem:[#allocation2 + $0x8] sm:$0xff] %vm1149_vm14, %v1140_v59  ;;  %1150 = vst.msk [vmem:[#allocation2] sm:$0xff] %vm1149_vm14, %v1138_v60 }
 0x17e   : > { %v1144_v23 = vpop.permute.xlu1 %1143  ;;  %v1142_v38 = vpop.permute.xlu0 %1141 }
 0x17f   : > { %1153 = vst.msk [vmem:[#allocation2 + $0x18] sm:$0xff] %vm1149_vm14, %v1144_v23  ;;  %1152 = vst.msk [vmem:[#allocation2 + $0x10] sm:$0xff] %vm1149_vm14, %v1142_v38 }
 0x182   : > { %v1167_v61 = vpop.permute.xlu1 %1166  ;;  %v1165_v62 = vpop.permute.xlu0 %1164 }
 0x183   : > { %1178 = vst.msk [vmem:[#allocation2 + $0x8] sm:$0xff] %vm1176_vm15, %v1167_v61  ;;  %1177 = vst.msk [vmem:[#allocation2] sm:$0xff] %vm1176_vm15, %v1165_v62 }
 0x186   : > { %v1171_v63 = vpop.permute.xlu1 %1170  ;;  %v1169_v0 = vpop.permute.xlu0 %1168 }
 0x187   : > { %1180 = vst.msk [vmem:[#allocation2 + $0x18] sm:$0xff] %vm1176_vm15, %v1171_v63  ;;  %1179 = vst.msk [vmem:[#allocation2 + $0x10] sm:$0xff] %vm1176_vm15, %v1169_v0 }
 0x18a   : > { %v1181_v1 = vld [vmem:[#allocation2] sm:$0xff]  ;;  %v1182_v2 = vld [vmem:[#allocation2 + $0x8] sm:$0xff] }
 0x18b   : > { %v1185_v4 = vpack.c.bf16 %v1182_v2, %v1181_v1 }
 0x18d   : > { %1875 = vmatprep.mubr.bf16.mxu0 %v1185_v4 }
 0x18e   : > { %v1183_v27 = vld [vmem:[#allocation2 + $0x10] sm:$0xff]  ;;  %v1184_v39 = vld [vmem:[#allocation2 + $0x18] sm:$0xff] }
 0x18f   : > { %v1186_v5 = vpack.c.bf16 %v1184_v39, %v1183_v27 }
 0x191   : > { %1876 = vmatmul.mubr.bf16.vlgmr.msra.gmra.mxu0 %v1186_v5 }
 0x251   : > { %v1877_v6 = vpop.f32.mrf.mxu0 }
 0x252   : > { %v1298_v16 = vadd.f32 %v1877_v6, %v1205_v10 }
 0x253   : > { %v1289_v8 = vpop.f32.mrf.mxu0 }
 0x254   : > { %v1290_v17 = vadd.f32 %v1289_v8, %v1203_v40 }
 0x255   : > { %v1878_v31 = vpop.f32.mrf.mxu0 }
 0x256   : > { %v1301_v13 = vadd.f32 %v1878_v31, %v1206_v9 }
 0x257   : > { %v1292_v14 = vpop.f32.mrf.mxu0 }
 0x258   : > { %v1293_v18 = vadd.f32 %v1292_v14, %v1204_v12  ;;  %v1306_v20 = vmax.f32 %v1298_v16, %v1301_v13 }
 0x25a   : > { %v1305_v21 = vmax.f32 %v1290_v17, %v1293_v18 }
 0x25c   : > { %v1307_v22 = vmax.f32 %v1305_v21, %v1306_v20 }
 0x25e   : > { %v1308_v24 = vrot.slane %v1307_v22, 4 }
 0x260   : > { %v1309_v25 = vmax.f32 %v1307_v22, %v1308_v24 }
 0x262   : > { %v1310_v26 = vrot.slane %v1309_v25, 2 }
 0x264   : > { %v1311_v28 = vmax.f32 %v1309_v25, %v1310_v26 }
 0x266   : > { %v1312_v29 = vrot.slane %v1311_v28, 1 }
 0x268   : > { %v1313_v32 = vmax.f32 %v1311_v28, %v1312_v29  ;;  %1319 = sbr.rel (%p1828_p1) target bundleno = 884 (0x374), region = 56 }
 0x26a   : > { %v1314_v41 = vmax.f32 %v1304_v30, %v1313_v32 }
 0x26c   : > { %1315 = vst [vmem:[#allocation3] sm:$0x1] %v1314_v41 }
 0x26d   : > { %v2013_v11 = vld [vmem:[%s2633_s4 + $0x38] sm:$0xff]   ;;  %v2151_v33 = vmov 0.0   ;;  %v2014_v42 = vld [vmem:[%s2633_s4 + $0x30] sm:$0xff]   ;;  %vm2152_vm0 = vmmov 0   ;;  %v2015_v43 = vld [vmem:[%s2633_s4 + $0x28] sm:$0xff]  }
 0x26e   : > { %1879 = vmatprep.subr.bf16.mxu0 %v2151_v33  ;;  %1895 = vmatprep.mubr.msk.bf16.mxu0 %vm2152_vm0, %v2151_v33  ;;  %v2016_v44 = vld [vmem:[%s2633_s4 + $0x20] sm:$0xff]   ;;  %v2017_v3 = vld [vmem:[%s2633_s4 + $0x18] sm:$0xff]   ;;  %v2018_v34 = vld [vmem:[%s2633_s4 + $0x10] sm:$0xff]  }
 0x26f   : > { %1880 = vmatpush3.bf16.msra.mxu0 %v2013_v11  ;;  %v2019_v45 = vld [vmem:[%s2633_s4 + $0x8] sm:$0xff]   ;;  %v1321_v47 = vld [vmem:[%s2632_s3] sm:$0x1] }
 0x270   : > { %1881 = vmatprep.subr.bf16.mxu0 %v2151_v33  ;;  %v2020_v7 = vld [vmem:[%s2633_s4] sm:$0xff]  }
 0x271   : > { %v1340_v49 = vld [vmem:[%s2634_s5] sm:$0x1] }
 0x273   : > { %1882 = vmatpush3.bf16.msra.mxu0 %v2014_v42  ;;  %v1320_v46 = vld [vmem:[#allocation3] sm:$0x1] }
 0x274   : > { %1883 = vmatprep.subr.bf16.mxu0 %v2151_v33  ;;  %v1322_v35 = vadd.f32 %v1321_v47, %v1320_v46 }
 0x276   : > { %v1323_v48 = vpack.c.bf16 %v1322_v35, %v1322_v35 }
 0x277   : > { %1884 = vmatpush3.bf16.msra.mxu0 %v2015_v43 }
 0x278   : > { %1885 = vmatprep.subr.bf16.mxu0 %v2151_v33 }
 0x27b   : > { %1886 = vmatpush3.bf16.msra.mxu0 %v2016_v44 }
 0x27c   : > { %1887 = vmatprep.subr.bf16.mxu0 %v2151_v33 }
 0x27f   : > { %1888 = vmatpush3.bf16.msra.mxu0 %v2017_v3 }
 0x280   : > { %1889 = vmatprep.subr.bf16.mxu0 %v2151_v33 }
 0x283   : > { %1890 = vmatpush3.bf16.msra.mxu0 %v2018_v34 }
 0x284   : > { %1891 = vmatprep.subr.bf16.mxu0 %v2151_v33 }
 0x287   : > { %1892 = vmatpush3.bf16.msra.mxu0 %v2019_v45 }
 0x288   : > { %1893 = vmatprep.subr.bf16.mxu0 %v2151_v33 }
 0x28b   : > { %1894 = vmatpush3.bf16.msra.mxu0 %v2020_v7 }
 0x28e   : > { %1896 = vmatmul.mubr.bf16.vlgmr.msra.gmra.mxu0 %v1323_v48 }
 0x34e   : > { %v1423_v50 = vpop.f32.mrf.mxu0 }
 0x34f   : > { %v1424_v15 = vadd.f32 %v1423_v50, %v1340_v49 }
 0x350   : > { %v1897_v36 = vpop.f32.mrf.mxu0 }
 0x351   : > { %v1429_v51 = vsub.f32 0.0, %v1424_v15 }
 0x352   : > { %v1426_v52 = vpop.f32.mrf.mxu0 }
 0x353   : > { %v1430_v53 = vmul.f32 1.442695, %v1429_v51 }
 0x354   : > { %v1898_v54 = vpop.f32.mrf.mxu0 }
 0x355   : > { %2021 = vpow2.f32 %v1430_v53 }
 0x362   : > { %v2022_v55 = vpop.eup %2021 }
 0x363   : > { %v1432_v19 = vadd.f32 1.0, %v2022_v55 }
 0x365   : > { %2023 = vrcp.f32 %v1432_v19 }
 0x372   : > { %v2024_v37 = vpop.eup %2023 }
 0x373   : > { %1434 = vst [vmem:[%s2272_s8] sm:$0x1] %v2024_v37 }
 0x374 PF: > { %s1837_s11 = sshll.u32 %s2105_s25, 4  ;;  %s1449_s7 = sshll.u32 %s2272_s8, 4  ;;  %s1450_s7 = int_to_ptr.vmem [resolvable:$true] %s1449_s7 }
 0x375   : > { %s1447_s17 = scalar_lea.hbm %s2635_s6, %s1837_s11  ;;  %s1436_s12 = scalar_lea.sflag [#allocation5], %s303_s14 }
 0x376   : > { %s2025_s18 = scalar_lea.vmem %s1450_s7, 16  ;;  %s2153_s19 = smov [#allocation4]  }
 0x377   : > { %p2026_p2 = scmp.ne.s32.totalorder %s1450_s7, %s2025_s18  ;;  %s2029_s20 = sshll.u32 %s2153_s19, 4  ;;  %s2030_s20 = int_to_ptr.vmem [resolvable:$false] %s2029_s20 }
 0x378   : > { %s2031_s29 = scalar_lea.vmem %s2030_s20, 32  ;;  %p2032_p6 = scmp.lt.s32.totalorder %s1450_s7, %s2030_s20 }
 0x379   : > { %p2027_p4 = pnand %p2026_p2, %p2238_p3  ;;  %p2033_p7 = scmp.lt.s32.totalorder %s2031_s29, %s2025_s18 }
 0x37b   : > { %p2028_p5 = pneg %p2027_p4  ;;  %p2034_p8 = por %p2033_p7, %p2032_p6 }
 0x37d   : > { %p2035_p10 = pnand %p2034_p8, %p2028_p5 }
 0x37f   : > { %2038 = shalt.err (!%p2035_p10)
}
 0x380   : > { %s2039_s25 = scalar_lea.hbm %s1447_s17, 16  ;;  %s2043_s24 = scalar_lea.hbm %s2635_s6, 32 }
 0x381   : > { %p2040_p11 = scmp.ne.s32.totalorder %s1447_s17, %s2039_s25  ;;  %p2044_p0 = scmp.lt.s32.totalorder %s1447_s17, %s2635_s6 }
 0x382   : > { %p2045_p1 = scmp.lt.s32.totalorder %s2043_s24, %s2039_s25 }
 0x383   : > { %p2041_p12 = pnand %p2040_p11, %p2238_p3 }
 0x384   : > { %p2046_p2 = por %p2045_p1, %p2044_p0 }
 0x385   : > { %p2042_p13 = pneg %p2041_p12 }
 0x387   : > { %p2047_p4 = pnand %p2046_p2, %p2042_p13 }
 0x389   : > { %2050 = shalt.err (!%p2047_p4)
}
 0x38a   : > { %1900 = dma.vmem_to_hbm [thread:$0]  (%p2238_p3), %s1450_s7, 16, %s1447_s17, %s1436_s12  }
 0x38b PF: > { %p1906_p5 = scmp.ge.s32.totalorder %s2117_s28, 2  ;;  %s1461_s16 = sand.u32 1, %s2089_s21  }
 0x38c   : > { %s1462_s15 = scalar_lea.sflag [#allocation5], %s1461_s16 }
 0x38d   : > { %p1903_p6 = pnand %p1906_p5, %p2248_p9 }
 0x38f   : > { %p1904_p7 = pneg %p1903_p6 }
 0x391   : > { %2084 = dma.done.wait (%p1904_p7), %s1462_s15, 16  }
 0x392   : > { %2086 = vsyncadd (%p1904_p7), %s1462_s15, 4294967280  ;;  %s19_s28 = sadd.s32 1, %s2117_s28   ;;  %s2641_s9 = sld [smem:[#allocation7_spill]] }
 0x393   : > { %p16_p8 = scmp.ge.s32.totalorder %s19_s28, 6   ;;  %s2642_s17 = sld [smem:[#allocation8_spill]] }
 0x394   : > { %s2643_s21 = smov %s2093_s22  ;;  %s2644_s22 = smov %s2097_s23 }
 0x395   : > { %s2645_s23 = smov %s2256_s13  ;;  %s2646_s24 = smov %s2109_s26 }
 0x396   : > { %s2647_s25 = smov %s2113_s27  ;;  %18 = sbr.rel (!%p16_p8) target bundleno = 5 (0x5), region = 132 }
 0x398   : > { %s2648_s26 = smov %s2641_s9 }
 0x399   : > { %s2649_s27 = smov %s2642_s17 }
 0x39b   :  { %1466 = vsyncpa [#allocation5], 1 }
 0x39c   :  { %1468 = vsyncpa [#allocation5 + $0x1], 1 }

</bundles_post_ra>
